<compile_context>
chip_gen: v7x
topology: tpu7x:2x2x1
jax: 0.10.0
libtpu: 0.0.40
codegen_flags: <defaults>
</compile_context>

<pallas_src>
import jax
import jax.numpy as jnp
from jax import lax
from jax.experimental import pallas as pl
from jax.experimental.pallas import tpu as pltpu


# ============================================================================
# Fused LSTM stack kernel: all layers in one launch, activations stay in VMEM.
# ============================================================================
def _make_fused_lstm_kernel(*, seq, batch, nhid, nlayers, time_unroll):

    def kernel(*refs):
        # ---- unpack refs: inputs | outputs | scratch ---------------------
        emb_ref, h0_ref, c0_ref = refs[0], refs[1], refs[2]
        layer_refs = [refs[3 + 3 * l: 6 + 3 * l] for l in range(nlayers)]
        x_out_ref = refs[3 + 3 * nlayers]   # (seq*batch, nhid) bf16 output,
                                            # doubles as inter-layer act buffer
        hn_ref = refs[4 + 3 * nlayers]      # (nlayers, batch, nhid) f32
        cn_ref = refs[5 + 3 * nlayers]      # (nlayers, batch, nhid) f32
        pre_scr = refs[6 + 3 * nlayers]     # (seq*batch, 4*nhid) f32 scratch

        for layer in range(nlayers):
            wih_ref, whh_ref, b_ref = layer_refs[layer]

            # --- Hoisted input projection for ALL timesteps at once -------
            # bf16 x bf16 -> f32 accumulation on the MXU; removes half the
            # matmul work (and the bias add) from the sequential path.
            x_in = emb_ref[...] if layer == 0 else x_out_ref[...]
            pre_scr[...] = (
                jnp.dot(x_in, wih_ref[...], preferred_element_type=jnp.float32)
                + b_ref[...])

            whh = whh_ref[...]              # (nhid, 4*nhid) f32, resident

            # --- Sequential recurrence (partial unroll) --------------------
            def step(t, carry):
                h_prev, c_prev = carry
                row = pl.multiple_of(t * batch, batch)
                gates = pre_scr[pl.ds(row, batch), :] + jnp.dot(
                    h_prev, whh, preferred_element_type=jnp.float32)
                # Gate layout (reordered at weight-packing time): [i, f, o, g]
                # -> one sigmoid over 3*nhid cols, one tanh over nhid cols.
                sig = jax.nn.sigmoid(gates[:, :3 * nhid])
                g_g = jnp.tanh(gates[:, 3 * nhid:])
                i_g = sig[:, 0 * nhid:1 * nhid]
                f_g = sig[:, 1 * nhid:2 * nhid]
                o_g = sig[:, 2 * nhid:3 * nhid]
                c_new = f_g * c_prev + i_g * g_g
                h_new = o_g * jnp.tanh(c_new)
                x_out_ref[pl.ds(row, batch), :] = h_new.astype(x_out_ref.dtype)
                return (h_new, c_new)

            h_fin, c_fin = lax.fori_loop(
                0, seq, step, (h0_ref[layer], c0_ref[layer]),
                unroll=time_unroll)

            # Final states written once per layer (not every timestep).
            hn_ref[layer] = h_fin
            cn_ref[layer] = c_fin
            # Inter-layer dropout -> identity in eval mode.

    return kernel


def fused_lstm_pallas(emb2d, h0, c0, w_ih_t, w_hh_t, bias, *, seq,
                      time_unroll=8):
    """One pallas_call: nlayers LSTM layers; returns (acts_bf16, h_n, c_n)."""
    sb, _ = emb2d.shape
    nlayers, batch, nhid = h0.shape
    assert sb == seq * batch

    kernel = _make_fused_lstm_kernel(
        seq=seq, batch=batch, nhid=nhid, nlayers=nlayers,
        time_unroll=min(time_unroll, seq))

    layer_args = []
    for l in range(nlayers):
        layer_args += [w_ih_t[l], w_hh_t[l], bias[l]]

    # Advisory cost estimate for the XLA scheduler.
    flops, transc = 0, 0
    bytes_accessed = (emb2d.size * emb2d.dtype.itemsize
                      + 4 * (h0.size + c0.size)
                      + 2 * seq * batch * nhid            # bf16 acts out
                      + 8 * nlayers * batch * nhid)       # h_n, c_n out
    weight_bytes = 0
    for l in range(nlayers):
        in_f = w_ih_t[l].shape[0]
        flops += 2 * seq * batch * (in_f + nhid) * 4 * nhid
        transc += seq * batch * 5 * nhid                  # 4*nhid gates + tanh(c)
        weight_bytes += (w_ih_t[l].size * w_ih_t[l].dtype.itemsize
                         + 4 * w_hh_t[l].size + 4 * bias[l].size)
    bytes_accessed += weight_bytes

    # Explicit VMEM budget from actual residency (+ pipeline margin), clamped
    # under the smallest physical VMEM (v7x, 64 MiB).
    resident = bytes_accessed + 4 * seq * batch * 4 * nhid    # + pre_scr
    vmem_limit = int(min(max(4 * resident + (4 << 20), 16 << 20), 64 << 20))

    out_shapes = (
        jax.ShapeDtypeStruct((seq * batch, nhid), jnp.bfloat16),    # acts
        jax.ShapeDtypeStruct((nlayers, batch, nhid), jnp.float32),  # h_n
        jax.ShapeDtypeStruct((nlayers, batch, nhid), jnp.float32),  # c_n
    )
    return pl.pallas_call(
        kernel,
        out_shape=out_shapes,
        scratch_shapes=[
            pltpu.VMEM((seq * batch, 4 * nhid), jnp.float32),  # hoisted proj
        ],
        compiler_params=pltpu.CompilerParams(vmem_limit_bytes=vmem_limit),
        cost_estimate=pl.CostEstimate(
            flops=int(flops), transcendentals=int(transc),
            bytes_accessed=int(bytes_accessed)),
    )(emb2d, h0, c0, *layer_args)


# ============================================================================
# Decoder kernel: (seq*batch, nhid) @ (nhid, ntoken) + bias, tiled over ntoken
# ============================================================================
def _decoder_kernel(x_ref, w_ref, b_ref, out_ref):
    out_ref[...] = (
        jnp.dot(x_ref[...], w_ref[...], preferred_element_type=jnp.float32)
        + b_ref[...])


def _pick_ntoken_tile(ntoken):
    for tn in (256, 128):                 # 256-multiple preferred (v6e/v7x MXU)
        if ntoken % tn == 0:
            return tn
    # TODO(synk): pad ntoken to a 128 multiple for ragged vocab sizes instead
    # of falling back to a single full-width tile.
    return ntoken


def decoder_pallas(x, dec_w_t, dec_b):
    m, nhid = x.shape
    ntoken = dec_w_t.shape[1]
    tn = _pick_ntoken_tile(ntoken)
    grid = (ntoken // tn,)

    flops = 2 * m * nhid * ntoken
    bytes_accessed = (x.size * x.dtype.itemsize
                      + dec_w_t.size * dec_w_t.dtype.itemsize
                      + 4 * dec_b.size + 4 * m * ntoken)
    block_bytes = (2 * m * nhid * x.dtype.itemsize               # x resident
                   + 2 * (nhid * tn * dec_w_t.dtype.itemsize     # w, dbl-buf
                          + 4 * tn                                # bias tile
                          + 4 * m * tn))                          # out tile
    vmem_limit = int(min(max(2 * block_bytes + (4 << 20), 16 << 20), 64 << 20))

    # TODO(synk): also tile over M = seq*batch (>=128 rows) at production sizes.
    return pl.pallas_call(
        _decoder_kernel,
        out_shape=jax.ShapeDtypeStruct((m, ntoken), jnp.float32),
        grid=grid,
        in_specs=[
            pl.BlockSpec((m, nhid), lambda j: (0, 0)),
            pl.BlockSpec((nhid, tn), lambda j: (0, j)),
            pl.BlockSpec((1, tn), lambda j: (0, j)),
        ],
        out_specs=pl.BlockSpec((m, tn), lambda j: (0, j)),
        compiler_params=pltpu.CompilerParams(
            dimension_semantics=("parallel",),
            vmem_limit_bytes=vmem_limit),
        cost_estimate=pl.CostEstimate(
            flops=int(flops), transcendentals=0,
            bytes_accessed=int(bytes_accessed)),
    )(x, dec_w_t, dec_b)


# ============================================================================
# Weight packing (PyTorch layout -> kernel layout)
# ============================================================================
def prepare_kernel_params(enc_w, lstm_raw, dec_w, dec_b, nhid):
    """Pack PyTorch-layout weights into the kernel layout.

    * gate rows reordered [i, f, g, o] -> [i, f, o, g] so the kernel computes
      one sigmoid over the first 3*nhid gate columns and one tanh over the
      last nhid (halves EUP work in the recurrence);
    * input-projection and decoder weights pre-cast to bf16 (MXU-native rate,
      half the resident VMEM); recurrent W_hh and biases stay f32.
    """
    def reorder(w4):     # leading dim is 4*nhid in PyTorch [i, f, g, o] order
        i = w4[0 * nhid:1 * nhid]
        f = w4[1 * nhid:2 * nhid]
        g = w4[2 * nhid:3 * nhid]
        o = w4[3 * nhid:4 * nhid]
        return jnp.concatenate([i, f, o, g], axis=0)

    w_ih_t, w_hh_t, bias = [], [], []
    for (w_ih, w_hh, b_ih, b_hh) in lstm_raw:
        w_ih_t.append(reorder(w_ih).T.astype(jnp.bfloat16))    # (in_f, 4*nhid)
        w_hh_t.append(reorder(w_hh).T)                         # (nhid, 4*nhid)
        bias.append(reorder(b_ih + b_hh)[None, :])             # (1, 4*nhid)

    return {
        "enc_w": enc_w,
        "w_ih_t": w_ih_t,
        "w_hh_t": w_hh_t,
        "bias": bias,
        "dec_w_t": dec_w.T.astype(jnp.bfloat16),               # (nhid, ntoken)
        "dec_b": dec_b,                                        # (1, ntoken)
    }


# ============================================================================
# Forward wrapper (equivalent of RNNModel.forward for rnn_type='LSTM')
# ============================================================================
def rnn_model_forward(params, tokens, hidden):
    h0, c0 = hidden                                    # (nlayers, batch, nhid)
    seq, batch = tokens.shape
    ntoken = params["dec_b"].shape[1]

    # Embedding lookup (gather) -- glue, plain JAX.  self.drop -> identity.
    # TODO(synk): fuse the gather into the LSTM kernel via scalar-prefetch
    # row-gather to save one HBM round trip of the embeddings.
    emb = jnp.take(params["enc_w"], tokens, axis=0)    # (seq, batch, ninp)
    emb2d = emb.reshape(seq * batch, -1).astype(jnp.bfloat16)

    x_out, hn, cn = fused_lstm_pallas(
        emb2d, h0, c0, params["w_ih_t"], params["w_hh_t"], params["bias"],
        seq=seq)
    decoded2d = decoder_pallas(x_out, params["dec_w_t"], params["dec_b"])

    decoded = decoded2d.reshape(seq, batch, ntoken)
    return decoded, (hn, cn)


# ============================================================================
# Pure-JAX f32 reference (PyTorch gate order) for correctness checking
# ============================================================================
def rnn_model_reference(enc_w, lstm_raw, dec_w, dec_b, tokens, hidden, nhid):
    h0, c0 = hidden
    emb = jnp.take(enc_w, tokens, axis=0)

    x = emb
    hns, cns = [], []
    for layer, (w_ih, w_hh, b_ih, b_hh) in enumerate(lstm_raw):
        wih_t, whh_t, b = w_ih.T, w_hh.T, (b_ih + b_hh)[None, :]

        def step(carry, xt, wih_t=wih_t, whh_t=whh_t, b=b):
            h, c = carry
            gates = xt @ wih_t + h @ whh_t + b
            i = jax.nn.sigmoid(gates[:, 0 * nhid:1 * nhid])
            f = jax.nn.sigmoid(gates[:, 1 * nhid:2 * nhid])
            g = jnp.tanh(gates[:, 2 * nhid:3 * nhid])
            o = jax.nn.sigmoid(gates[:, 3 * nhid:4 * nhid])
            c = f * c + i * g
            h = o * jnp.tanh(c)
            return (h, c), h

        (hn, cn), x = lax.scan(step, (h0[layer], c0[layer]), x)
        hns.append(hn)
        cns.append(cn)

    seq, batch, _ = x.shape
    decoded = (x.reshape(seq * batch, nhid) @ dec_w.T + dec_b
               ).reshape(seq, batch, -1)
    return decoded, (jnp.stack(hns), jnp.stack(cns))


# ============================================================================
# Main
# ============================================================================
if __name__ == "__main__":
    # Small shapes consistent with the module's forward.
    ntoken, ninp, nhid, nlayers = 512, 32, 32, 2
    seq, batch = 8, 8
    initrange = 0.1
    stdv = 1.0 / (nhid ** 0.5)

    key = jax.random.PRNGKey(0)
    keys = jax.random.split(key, 3 + 4 * nlayers)

    # Parameter init mirroring RNNModel.init_weights / nn.LSTM defaults
    # (PyTorch layout; packed for the kernel by prepare_kernel_params).
    enc_w = jax.random.uniform(keys[0], (ntoken, ninp), jnp.float32,
                               -initrange, initrange)
    dec_w = jax.random.uniform(keys[1], (ntoken, nhid), jnp.float32,
                               -initrange, initrange)
    dec_b = jnp.zeros((1, ntoken), jnp.float32)

    lstm_raw = []
    for layer in range(nlayers):
        in_f = ninp if layer == 0 else nhid
        k0, k1, k2, k3 = keys[3 + 4 * layer: 3 + 4 * (layer + 1)]
        w_ih = jax.random.uniform(k0, (4 * nhid, in_f), jnp.float32, -stdv, stdv)
        w_hh = jax.random.uniform(k1, (4 * nhid, nhid), jnp.float32, -stdv, stdv)
        b_ih = jax.random.uniform(k2, (4 * nhid,), jnp.float32, -stdv, stdv)
        b_hh = jax.random.uniform(k3, (4 * nhid,), jnp.float32, -stdv, stdv)
        lstm_raw.append((w_ih, w_hh, b_ih, b_hh))

    params = prepare_kernel_params(enc_w, lstm_raw, dec_w, dec_b, nhid)

    # Inputs: token ids (seq, batch) and zero hidden state (as init_hidden()).
    tokens = jax.random.randint(keys[2], (seq, batch), 0, ntoken, jnp.int32)
    h0 = jnp.zeros((nlayers, batch, nhid), jnp.float32)
    c0 = jnp.zeros((nlayers, batch, nhid), jnp.float32)

    decoded, (hn, cn) = rnn_model_forward(params, tokens, (h0, c0))
    jax.block_until_ready(decoded)
    jax.block_until_ready(hn)
    jax.block_until_ready(cn)

    # Correctness check vs pure-JAX f32 reference.  The kernel uses bf16 MXU
    # operands for the input projection / decoder, so use a bf16-scale
    # tolerance against the full-precision reference.
    ref_dec, (ref_hn, ref_cn) = rnn_model_reference(
        enc_w, lstm_raw, dec_w, dec_b, tokens, (h0, c0), nhid)
    assert decoded.shape == (seq, batch, ntoken)
    assert hn.shape == (nlayers, batch, nhid) and cn.shape == (nlayers, batch, nhid)
    assert jnp.allclose(decoded, ref_dec, atol=3e-2, rtol=3e-2)
    assert jnp.allclose(hn, ref_hn, atol=3e-2, rtol=3e-2)
    assert jnp.allclose(cn, ref_cn, atol=3e-2, rtol=3e-2)

    print("KERNEL_OK")
</pallas_src>

<mosaic_0001>
module attributes {stable_mosaic.version = 11 : i64} {
  func.func @kernel(%arg0: memref<64x32xbf16, #tpu.memory_space<vmem>>, %arg1: memref<2x8x32xf32, #tpu.memory_space<vmem>>, %arg2: memref<2x8x32xf32, #tpu.memory_space<vmem>>, %arg3: memref<32x128xbf16, #tpu.memory_space<vmem>>, %arg4: memref<32x128xf32, #tpu.memory_space<vmem>>, %arg5: memref<1x128xf32, #tpu.memory_space<vmem>>, %arg6: memref<32x128xbf16, #tpu.memory_space<vmem>>, %arg7: memref<32x128xf32, #tpu.memory_space<vmem>>, %arg8: memref<1x128xf32, #tpu.memory_space<vmem>>, %arg9: memref<64x32xbf16, #tpu.memory_space<vmem>>, %arg10: memref<2x8x32xf32, #tpu.memory_space<vmem>>, %arg11: memref<2x8x32xf32, #tpu.memory_space<vmem>>, %arg12: memref<64x128xf32, #tpu.memory_space<vmem>>) attributes {dimension_semantics = [], scalar_prefetch = 0 : i64, scratch_operands = 1 : i64, tpu.core_type = #tpu.core_type<tc>} {
    %c0 = arith.constant 0 : index
    %c0_0 = arith.constant 0 : index
    %0 = vector.load %arg0[%c0, %c0_0] : memref<64x32xbf16, #tpu.memory_space<vmem>>, vector<64x32xbf16>
    %c0_1 = arith.constant 0 : index
    %c0_2 = arith.constant 0 : index
    %1 = vector.load %arg3[%c0_1, %c0_2] : memref<32x128xbf16, #tpu.memory_space<vmem>>, vector<32x128xbf16>
    %cst = arith.constant dense<0.000000e+00> : vector<64x128xf32>
    %2 = tpu.matmul %0, %1, %cst {dimension_numbers = #tpu.dot_dimension_numbers<[1], [0], [0], [1], [0, 0, 1, 1], [], []>} : vector<64x32xbf16>, vector<32x128xbf16>, vector<64x128xf32> -> vector<64x128xf32>
    %c0_3 = arith.constant 0 : index
    %c0_4 = arith.constant 0 : index
    %3 = vector.load %arg5[%c0_3, %c0_4] : memref<1x128xf32, #tpu.memory_space<vmem>>, vector<1x128xf32>
    %4 = vector.broadcast %3 : vector<1x128xf32> to vector<64x128xf32>
    %5 = arith.addf %2, %4 : vector<64x128xf32>
    %c0_5 = arith.constant 0 : index
    %c0_6 = arith.constant 0 : index
    %6 = vector.load %arg12[%c0_5, %c0_6] : memref<64x128xf32, #tpu.memory_space<vmem>>, vector<64x128xf32>
    tpu.vector_store %arg12[%c0_5, %c0_6], %5 {strides = array<i32>} : memref<64x128xf32, #tpu.memory_space<vmem>>, vector<64x128xf32>,
    %c0_7 = arith.constant 0 : index
    %c0_8 = arith.constant 0 : index
    %7 = vector.load %arg4[%c0_7, %c0_8] : memref<32x128xf32, #tpu.memory_space<vmem>>, vector<32x128xf32>
    %c0_9 = arith.constant 0 : index
    %c0_10 = arith.constant 0 : index
    %c0_11 = arith.constant 0 : index
    %8 = vector.load %arg1[%c0_9, %c0_10, %c0_11] : memref<2x8x32xf32, #tpu.memory_space<vmem>>, vector<1x8x32xf32>
    %9 = vector.shape_cast %8 : vector<1x8x32xf32> to vector<8x32xf32>
    %c0_12 = arith.constant 0 : index
    %c0_13 = arith.constant 0 : index
    %c0_14 = arith.constant 0 : index
    %10 = vector.load %arg2[%c0_12, %c0_13, %c0_14] : memref<2x8x32xf32, #tpu.memory_space<vmem>>, vector<1x8x32xf32>
    %11 = vector.shape_cast %10 : vector<1x8x32xf32> to vector<8x32xf32>
    %c0_i32 = arith.constant 0 : i32
    %c8_i32 = arith.constant 8 : i32
    %12 = arith.muli %c0_i32, %c8_i32 : i32
    %13 = tpu.assume_multiple %12, 8 : i32
    %14 = arith.index_cast %13 : i32 to index
    %c0_15 = arith.constant 0 : index
    %15 = vector.load %arg12[%14, %c0_15] : memref<64x128xf32, #tpu.memory_space<vmem>>, vector<8x128xf32>
    %cst_16 = arith.constant dense<0.000000e+00> : vector<8x128xf32>
    %16 = tpu.matmul %9, %7, %cst_16 {dimension_numbers = #tpu.dot_dimension_numbers<[1], [0], [0], [1], [0, 0, 1, 1], [], []>} : vector<8x32xf32>, vector<32x128xf32>, vector<8x128xf32> -> vector<8x128xf32>
    %17 = arith.addf %15, %16 : vector<8x128xf32>
    %18 = vector.extract_strided_slice %17 {offsets = [0, 0], sizes = [8, 96], strides = [1, 1]} : vector<8x128xf32> to vector<8x96xf32>
    %19 = arith.negf %18 : vector<8x96xf32>
    %20 = math.exp %19 : vector<8x96xf32>
    %cst_17 = arith.constant 1.000000e+00 : f32
    %21 = vector.broadcast %cst_17 : f32 to vector<8x96xf32>
    %22 = arith.addf %21, %20 : vector<8x96xf32>
    %23 = arith.divf %21, %22 : vector<8x96xf32>
    %24 = vector.extract_strided_slice %17 {offsets = [0, 96], sizes = [8, 32], strides = [1, 1]} : vector<8x128xf32> to vector<8x32xf32>
    %25 = math.tanh %24 : vector<8x32xf32>
    %26 = vector.extract_strided_slice %23 {offsets = [0, 0], sizes = [8, 32], strides = [1, 1]} : vector<8x96xf32> to vector<8x32xf32>
    %27 = vector.extract_strided_slice %23 {offsets = [0, 32], sizes = [8, 32], strides = [1, 1]} : vector<8x96xf32> to vector<8x32xf32>
    %28 = vector.extract_strided_slice %23 {offsets = [0, 64], sizes = [8, 32], strides = [1, 1]} : vector<8x96xf32> to vector<8x32xf32>
    %29 = arith.mulf %27, %11 : vector<8x32xf32>
    %30 = arith.mulf %26, %25 : vector<8x32xf32>
    %31 = arith.addf %29, %30 : vector<8x32xf32>
    %32 = math.tanh %31 : vector<8x32xf32>
    %33 = arith.mulf %28, %32 : vector<8x32xf32>
    %34 = arith.truncf %33 : vector<8x32xf32> to vector<8x32xbf16>
    %35 = arith.index_cast %13 : i32 to index
    %c0_18 = arith.constant 0 : index
    %36 = vector.load %arg9[%35, %c0_18] : memref<64x32xbf16, #tpu.memory_space<vmem>>, vector<8x32xbf16>
    tpu.vector_store %arg9[%35, %c0_18], %34 {strides = array<i32>} : memref<64x32xbf16, #tpu.memory_space<vmem>>, vector<8x32xbf16>,
    %c1_i32 = arith.constant 1 : i32
    %c8_i32_19 = arith.constant 8 : i32
    %37 = arith.muli %c1_i32, %c8_i32_19 : i32
    %38 = tpu.assume_multiple %37, 8 : i32
    %39 = arith.index_cast %38 : i32 to index
    %c0_20 = arith.constant 0 : index
    %40 = vector.load %arg12[%39, %c0_20] : memref<64x128xf32, #tpu.memory_space<vmem>>, vector<8x128xf32>
    %cst_21 = arith.constant dense<0.000000e+00> : vector<8x128xf32>
    %41 = tpu.matmul %33, %7, %cst_21 {dimension_numbers = #tpu.dot_dimension_numbers<[1], [0], [0], [1], [0, 0, 1, 1], [], []>} : vector<8x32xf32>, vector<32x128xf32>, vector<8x128xf32> -> vector<8x128xf32>
    %42 = arith.addf %40, %41 : vector<8x128xf32>
    %43 = vector.extract_strided_slice %42 {offsets = [0, 0], sizes = [8, 96], strides = [1, 1]} : vector<8x128xf32> to vector<8x96xf32>
    %44 = arith.negf %43 : vector<8x96xf32>
    %45 = math.exp %44 : vector<8x96xf32>
    %cst_22 = arith.constant 1.000000e+00 : f32
    %46 = vector.broadcast %cst_22 : f32 to vector<8x96xf32>
    %47 = arith.addf %46, %45 : vector<8x96xf32>
    %48 = arith.divf %46, %47 : vector<8x96xf32>
    %49 = vector.extract_strided_slice %42 {offsets = [0, 96], sizes = [8, 32], strides = [1, 1]} : vector<8x128xf32> to vector<8x32xf32>
    %50 = math.tanh %49 : vector<8x32xf32>
    %51 = vector.extract_strided_slice %48 {offsets = [0, 0], sizes = [8, 32], strides = [1, 1]} : vector<8x96xf32> to vector<8x32xf32>
    %52 = vector.extract_strided_slice %48 {offsets = [0, 32], sizes = [8, 32], strides = [1, 1]} : vector<8x96xf32> to vector<8x32xf32>
    %53 = vector.extract_strided_slice %48 {offsets = [0, 64], sizes = [8, 32], strides = [1, 1]} : vector<8x96xf32> to vector<8x32xf32>
    %54 = arith.mulf %52, %31 : vector<8x32xf32>
    %55 = arith.mulf %51, %50 : vector<8x32xf32>
    %56 = arith.addf %54, %55 : vector<8x32xf32>
    %57 = math.tanh %56 : vector<8x32xf32>
    %58 = arith.mulf %53, %57 : vector<8x32xf32>
    %59 = arith.truncf %58 : vector<8x32xf32> to vector<8x32xbf16>
    %60 = arith.index_cast %38 : i32 to index
    %c0_23 = arith.constant 0 : index
    %61 = vector.load %arg9[%60, %c0_23] : memref<64x32xbf16, #tpu.memory_space<vmem>>, vector<8x32xbf16>
    tpu.vector_store %arg9[%60, %c0_23], %59 {strides = array<i32>} : memref<64x32xbf16, #tpu.memory_space<vmem>>, vector<8x32xbf16>,
    %c2_i32 = arith.constant 2 : i32
    %c8_i32_24 = arith.constant 8 : i32
    %62 = arith.muli %c2_i32, %c8_i32_24 : i32
    %63 = tpu.assume_multiple %62, 8 : i32
    %64 = arith.index_cast %63 : i32 to index
    %c0_25 = arith.constant 0 : index
    %65 = vector.load %arg12[%64, %c0_25] : memref<64x128xf32, #tpu.memory_space<vmem>>, vector<8x128xf32>
    %cst_26 = arith.constant dense<0.000000e+00> : vector<8x128xf32>
    %66 = tpu.matmul %58, %7, %cst_26 {dimension_numbers = #tpu.dot_dimension_numbers<[1], [0], [0], [1], [0, 0, 1, 1], [], []>} : vector<8x32xf32>, vector<32x128xf32>, vector<8x128xf32> -> vector<8x128xf32>
    %67 = arith.addf %65, %66 : vector<8x128xf32>
    %68 = vector.extract_strided_slice %67 {offsets = [0, 0], sizes = [8, 96], strides = [1, 1]} : vector<8x128xf32> to vector<8x96xf32>
    %69 = arith.negf %68 : vector<8x96xf32>
    %70 = math.exp %69 : vector<8x96xf32>
    %cst_27 = arith.constant 1.000000e+00 : f32
    %71 = vector.broadcast %cst_27 : f32 to vector<8x96xf32>
    %72 = arith.addf %71, %70 : vector<8x96xf32>
    %73 = arith.divf %71, %72 : vector<8x96xf32>
    %74 = vector.extract_strided_slice %67 {offsets = [0, 96], sizes = [8, 32], strides = [1, 1]} : vector<8x128xf32> to vector<8x32xf32>
    %75 = math.tanh %74 : vector<8x32xf32>
    %76 = vector.extract_strided_slice %73 {offsets = [0, 0], sizes = [8, 32], strides = [1, 1]} : vector<8x96xf32> to vector<8x32xf32>
    %77 = vector.extract_strided_slice %73 {offsets = [0, 32], sizes = [8, 32], strides = [1, 1]} : vector<8x96xf32> to vector<8x32xf32>
    %78 = vector.extract_strided_slice %73 {offsets = [0, 64], sizes = [8, 32], strides = [1, 1]} : vector<8x96xf32> to vector<8x32xf32>
    %79 = arith.mulf %77, %56 : vector<8x32xf32>
    %80 = arith.mulf %76, %75 : vector<8x32xf32>
    %81 = arith.addf %79, %80 : vector<8x32xf32>
    %82 = math.tanh %81 : vector<8x32xf32>
    %83 = arith.mulf %78, %82 : vector<8x32xf32>
    %84 = arith.truncf %83 : vector<8x32xf32> to vector<8x32xbf16>
    %85 = arith.index_cast %63 : i32 to index
    %c0_28 = arith.constant 0 : index
    %86 = vector.load %arg9[%85, %c0_28] : memref<64x32xbf16, #tpu.memory_space<vmem>>, vector<8x32xbf16>
    tpu.vector_store %arg9[%85, %c0_28], %84 {strides = array<i32>} : memref<64x32xbf16, #tpu.memory_space<vmem>>, vector<8x32xbf16>,
    %c3_i32 = arith.constant 3 : i32
    %c8_i32_29 = arith.constant 8 : i32
    %87 = arith.muli %c3_i32, %c8_i32_29 : i32
    %88 = tpu.assume_multiple %87, 8 : i32
    %89 = arith.index_cast %88 : i32 to index
    %c0_30 = arith.constant 0 : index
    %90 = vector.load %arg12[%89, %c0_30] : memref<64x128xf32, #tpu.memory_space<vmem>>, vector<8x128xf32>
    %cst_31 = arith.constant dense<0.000000e+00> : vector<8x128xf32>
    %91 = tpu.matmul %83, %7, %cst_31 {dimension_numbers = #tpu.dot_dimension_numbers<[1], [0], [0], [1], [0, 0, 1, 1], [], []>} : vector<8x32xf32>, vector<32x128xf32>, vector<8x128xf32> -> vector<8x128xf32>
    %92 = arith.addf %90, %91 : vector<8x128xf32>
    %93 = vector.extract_strided_slice %92 {offsets = [0, 0], sizes = [8, 96], strides = [1, 1]} : vector<8x128xf32> to vector<8x96xf32>
    %94 = arith.negf %93 : vector<8x96xf32>
    %95 = math.exp %94 : vector<8x96xf32>
    %cst_32 = arith.constant 1.000000e+00 : f32
    %96 = vector.broadcast %cst_32 : f32 to vector<8x96xf32>
    %97 = arith.addf %96, %95 : vector<8x96xf32>
    %98 = arith.divf %96, %97 : vector<8x96xf32>
    %99 = vector.extract_strided_slice %92 {offsets = [0, 96], sizes = [8, 32], strides = [1, 1]} : vector<8x128xf32> to vector<8x32xf32>
    %100 = math.tanh %99 : vector<8x32xf32>
    %101 = vector.extract_strided_slice %98 {offsets = [0, 0], sizes = [8, 32], strides = [1, 1]} : vector<8x96xf32> to vector<8x32xf32>
    %102 = vector.extract_strided_slice %98 {offsets = [0, 32], sizes = [8, 32], strides = [1, 1]} : vector<8x96xf32> to vector<8x32xf32>
    %103 = vector.extract_strided_slice %98 {offsets = [0, 64], sizes = [8, 32], strides = [1, 1]} : vector<8x96xf32> to vector<8x32xf32>
    %104 = arith.mulf %102, %81 : vector<8x32xf32>
    %105 = arith.mulf %101, %100 : vector<8x32xf32>
    %106 = arith.addf %104, %105 : vector<8x32xf32>
    %107 = math.tanh %106 : vector<8x32xf32>
    %108 = arith.mulf %103, %107 : vector<8x32xf32>
    %109 = arith.truncf %108 : vector<8x32xf32> to vector<8x32xbf16>
    %110 = arith.index_cast %88 : i32 to index
    %c0_33 = arith.constant 0 : index
    %111 = vector.load %arg9[%110, %c0_33] : memref<64x32xbf16, #tpu.memory_space<vmem>>, vector<8x32xbf16>
    tpu.vector_store %arg9[%110, %c0_33], %109 {strides = array<i32>} : memref<64x32xbf16, #tpu.memory_space<vmem>>, vector<8x32xbf16>,
    %c4_i32 = arith.constant 4 : i32
    %c8_i32_34 = arith.constant 8 : i32
    %112 = arith.muli %c4_i32, %c8_i32_34 : i32
    %113 = tpu.assume_multiple %112, 8 : i32
    %114 = arith.index_cast %113 : i32 to index
    %c0_35 = arith.constant 0 : index
    %115 = vector.load %arg12[%114, %c0_35] : memref<64x128xf32, #tpu.memory_space<vmem>>, vector<8x128xf32>
    %cst_36 = arith.constant dense<0.000000e+00> : vector<8x128xf32>
    %116 = tpu.matmul %108, %7, %cst_36 {dimension_numbers = #tpu.dot_dimension_numbers<[1], [0], [0], [1], [0, 0, 1, 1], [], []>} : vector<8x32xf32>, vector<32x128xf32>, vector<8x128xf32> -> vector<8x128xf32>
    %117 = arith.addf %115, %116 : vector<8x128xf32>
    %118 = vector.extract_strided_slice %117 {offsets = [0, 0], sizes = [8, 96], strides = [1, 1]} : vector<8x128xf32> to vector<8x96xf32>
    %119 = arith.negf %118 : vector<8x96xf32>
    %120 = math.exp %119 : vector<8x96xf32>
    %cst_37 = arith.constant 1.000000e+00 : f32
    %121 = vector.broadcast %cst_37 : f32 to vector<8x96xf32>
    %122 = arith.addf %121, %120 : vector<8x96xf32>
    %123 = arith.divf %121, %122 : vector<8x96xf32>
    %124 = vector.extract_strided_slice %117 {offsets = [0, 96], sizes = [8, 32], strides = [1, 1]} : vector<8x128xf32> to vector<8x32xf32>
    %125 = math.tanh %124 : vector<8x32xf32>
    %126 = vector.extract_strided_slice %123 {offsets = [0, 0], sizes = [8, 32], strides = [1, 1]} : vector<8x96xf32> to vector<8x32xf32>
    %127 = vector.extract_strided_slice %123 {offsets = [0, 32], sizes = [8, 32], strides = [1, 1]} : vector<8x96xf32> to vector<8x32xf32>
    %128 = vector.extract_strided_slice %123 {offsets = [0, 64], sizes = [8, 32], strides = [1, 1]} : vector<8x96xf32> to vector<8x32xf32>
    %129 = arith.mulf %127, %106 : vector<8x32xf32>
    %130 = arith.mulf %126, %125 : vector<8x32xf32>
    %131 = arith.addf %129, %130 : vector<8x32xf32>
    %132 = math.tanh %131 : vector<8x32xf32>
    %133 = arith.mulf %128, %132 : vector<8x32xf32>
    %134 = arith.truncf %133 : vector<8x32xf32> to vector<8x32xbf16>
    %135 = arith.index_cast %113 : i32 to index
    %c0_38 = arith.constant 0 : index
    %136 = vector.load %arg9[%135, %c0_38] : memref<64x32xbf16, #tpu.memory_space<vmem>>, vector<8x32xbf16>
    tpu.vector_store %arg9[%135, %c0_38], %134 {strides = array<i32>} : memref<64x32xbf16, #tpu.memory_space<vmem>>, vector<8x32xbf16>,
    %c5_i32 = arith.constant 5 : i32
    %c8_i32_39 = arith.constant 8 : i32
    %137 = arith.muli %c5_i32, %c8_i32_39 : i32
    %138 = tpu.assume_multiple %137, 8 : i32
    %139 = arith.index_cast %138 : i32 to index
    %c0_40 = arith.constant 0 : index
    %140 = vector.load %arg12[%139, %c0_40] : memref<64x128xf32, #tpu.memory_space<vmem>>, vector<8x128xf32>
    %cst_41 = arith.constant dense<0.000000e+00> : vector<8x128xf32>
    %141 = tpu.matmul %133, %7, %cst_41 {dimension_numbers = #tpu.dot_dimension_numbers<[1], [0], [0], [1], [0, 0, 1, 1], [], []>} : vector<8x32xf32>, vector<32x128xf32>, vector<8x128xf32> -> vector<8x128xf32>
    %142 = arith.addf %140, %141 : vector<8x128xf32>
    %143 = vector.extract_strided_slice %142 {offsets = [0, 0], sizes = [8, 96], strides = [1, 1]} : vector<8x128xf32> to vector<8x96xf32>
    %144 = arith.negf %143 : vector<8x96xf32>
    %145 = math.exp %144 : vector<8x96xf32>
    %cst_42 = arith.constant 1.000000e+00 : f32
    %146 = vector.broadcast %cst_42 : f32 to vector<8x96xf32>
    %147 = arith.addf %146, %145 : vector<8x96xf32>
    %148 = arith.divf %146, %147 : vector<8x96xf32>
    %149 = vector.extract_strided_slice %142 {offsets = [0, 96], sizes = [8, 32], strides = [1, 1]} : vector<8x128xf32> to vector<8x32xf32>
    %150 = math.tanh %149 : vector<8x32xf32>
    %151 = vector.extract_strided_slice %148 {offsets = [0, 0], sizes = [8, 32], strides = [1, 1]} : vector<8x96xf32> to vector<8x32xf32>
    %152 = vector.extract_strided_slice %148 {offsets = [0, 32], sizes = [8, 32], strides = [1, 1]} : vector<8x96xf32> to vector<8x32xf32>
    %153 = vector.extract_strided_slice %148 {offsets = [0, 64], sizes = [8, 32], strides = [1, 1]} : vector<8x96xf32> to vector<8x32xf32>
    %154 = arith.mulf %152, %131 : vector<8x32xf32>
    %155 = arith.mulf %151, %150 : vector<8x32xf32>
    %156 = arith.addf %154, %155 : vector<8x32xf32>
    %157 = math.tanh %156 : vector<8x32xf32>
    %158 = arith.mulf %153, %157 : vector<8x32xf32>
    %159 = arith.truncf %158 : vector<8x32xf32> to vector<8x32xbf16>
    %160 = arith.index_cast %138 : i32 to index
    %c0_43 = arith.constant 0 : index
    %161 = vector.load %arg9[%160, %c0_43] : memref<64x32xbf16, #tpu.memory_space<vmem>>, vector<8x32xbf16>
    tpu.vector_store %arg9[%160, %c0_43], %159 {strides = array<i32>} : memref<64x32xbf16, #tpu.memory_space<vmem>>, vector<8x32xbf16>,
    %c6_i32 = arith.constant 6 : i32
    %c8_i32_44 = arith.constant 8 : i32
    %162 = arith.muli %c6_i32, %c8_i32_44 : i32
    %163 = tpu.assume_multiple %162, 8 : i32
    %164 = arith.index_cast %163 : i32 to index
    %c0_45 = arith.constant 0 : index
    %165 = vector.load %arg12[%164, %c0_45] : memref<64x128xf32, #tpu.memory_space<vmem>>, vector<8x128xf32>
    %cst_46 = arith.constant dense<0.000000e+00> : vector<8x128xf32>
    %166 = tpu.matmul %158, %7, %cst_46 {dimension_numbers = #tpu.dot_dimension_numbers<[1], [0], [0], [1], [0, 0, 1, 1], [], []>} : vector<8x32xf32>, vector<32x128xf32>, vector<8x128xf32> -> vector<8x128xf32>
    %167 = arith.addf %165, %166 : vector<8x128xf32>
    %168 = vector.extract_strided_slice %167 {offsets = [0, 0], sizes = [8, 96], strides = [1, 1]} : vector<8x128xf32> to vector<8x96xf32>
    %169 = arith.negf %168 : vector<8x96xf32>
    %170 = math.exp %169 : vector<8x96xf32>
    %cst_47 = arith.constant 1.000000e+00 : f32
    %171 = vector.broadcast %cst_47 : f32 to vector<8x96xf32>
    %172 = arith.addf %171, %170 : vector<8x96xf32>
    %173 = arith.divf %171, %172 : vector<8x96xf32>
    %174 = vector.extract_strided_slice %167 {offsets = [0, 96], sizes = [8, 32], strides = [1, 1]} : vector<8x128xf32> to vector<8x32xf32>
    %175 = math.tanh %174 : vector<8x32xf32>
    %176 = vector.extract_strided_slice %173 {offsets = [0, 0], sizes = [8, 32], strides = [1, 1]} : vector<8x96xf32> to vector<8x32xf32>
    %177 = vector.extract_strided_slice %173 {offsets = [0, 32], sizes = [8, 32], strides = [1, 1]} : vector<8x96xf32> to vector<8x32xf32>
    %178 = vector.extract_strided_slice %173 {offsets = [0, 64], sizes = [8, 32], strides = [1, 1]} : vector<8x96xf32> to vector<8x32xf32>
    %179 = arith.mulf %177, %156 : vector<8x32xf32>
    %180 = arith.mulf %176, %175 : vector<8x32xf32>
    %181 = arith.addf %179, %180 : vector<8x32xf32>
    %182 = math.tanh %181 : vector<8x32xf32>
    %183 = arith.mulf %178, %182 : vector<8x32xf32>
    %184 = arith.truncf %183 : vector<8x32xf32> to vector<8x32xbf16>
    %185 = arith.index_cast %163 : i32 to index
    %c0_48 = arith.constant 0 : index
    %186 = vector.load %arg9[%185, %c0_48] : memref<64x32xbf16, #tpu.memory_space<vmem>>, vector<8x32xbf16>
    tpu.vector_store %arg9[%185, %c0_48], %184 {strides = array<i32>} : memref<64x32xbf16, #tpu.memory_space<vmem>>, vector<8x32xbf16>,
    %c7_i32 = arith.constant 7 : i32
    %c8_i32_49 = arith.constant 8 : i32
    %187 = arith.muli %c7_i32, %c8_i32_49 : i32
    %188 = tpu.assume_multiple %187, 8 : i32
    %189 = arith.index_cast %188 : i32 to index
    %c0_50 = arith.constant 0 : index
    %190 = vector.load %arg12[%189, %c0_50] : memref<64x128xf32, #tpu.memory_space<vmem>>, vector<8x128xf32>
    %cst_51 = arith.constant dense<0.000000e+00> : vector<8x128xf32>
    %191 = tpu.matmul %183, %7, %cst_51 {dimension_numbers = #tpu.dot_dimension_numbers<[1], [0], [0], [1], [0, 0, 1, 1], [], []>} : vector<8x32xf32>, vector<32x128xf32>, vector<8x128xf32> -> vector<8x128xf32>
    %192 = arith.addf %190, %191 : vector<8x128xf32>
    %193 = vector.extract_strided_slice %192 {offsets = [0, 0], sizes = [8, 96], strides = [1, 1]} : vector<8x128xf32> to vector<8x96xf32>
    %194 = arith.negf %193 : vector<8x96xf32>
    %195 = math.exp %194 : vector<8x96xf32>
    %cst_52 = arith.constant 1.000000e+00 : f32
    %196 = vector.broadcast %cst_52 : f32 to vector<8x96xf32>
    %197 = arith.addf %196, %195 : vector<8x96xf32>
    %198 = arith.divf %196, %197 : vector<8x96xf32>
    %199 = vector.extract_strided_slice %192 {offsets = [0, 96], sizes = [8, 32], strides = [1, 1]} : vector<8x128xf32> to vector<8x32xf32>
    %200 = math.tanh %199 : vector<8x32xf32>
    %201 = vector.extract_strided_slice %198 {offsets = [0, 0], sizes = [8, 32], strides = [1, 1]} : vector<8x96xf32> to vector<8x32xf32>
    %202 = vector.extract_strided_slice %198 {offsets = [0, 32], sizes = [8, 32], strides = [1, 1]} : vector<8x96xf32> to vector<8x32xf32>
    %203 = vector.extract_strided_slice %198 {offsets = [0, 64], sizes = [8, 32], strides = [1, 1]} : vector<8x96xf32> to vector<8x32xf32>
    %204 = arith.mulf %202, %181 : vector<8x32xf32>
    %205 = arith.mulf %201, %200 : vector<8x32xf32>
    %206 = arith.addf %204, %205 : vector<8x32xf32>
    %207 = math.tanh %206 : vector<8x32xf32>
    %208 = arith.mulf %203, %207 : vector<8x32xf32>
    %209 = arith.truncf %208 : vector<8x32xf32> to vector<8x32xbf16>
    %210 = arith.index_cast %188 : i32 to index
    %c0_53 = arith.constant 0 : index
    %211 = vector.load %arg9[%210, %c0_53] : memref<64x32xbf16, #tpu.memory_space<vmem>>, vector<8x32xbf16>
    tpu.vector_store %arg9[%210, %c0_53], %209 {strides = array<i32>} : memref<64x32xbf16, #tpu.memory_space<vmem>>, vector<8x32xbf16>,
    %c8_i32_54 = arith.constant 8 : i32
    %c0_55 = arith.constant 0 : index
    %c0_56 = arith.constant 0 : index
    %c0_57 = arith.constant 0 : index
    %212 = vector.load %arg10[%c0_55, %c0_56, %c0_57] : memref<2x8x32xf32, #tpu.memory_space<vmem>>, vector<1x8x32xf32>
    %213 = vector.shape_cast %212 : vector<1x8x32xf32> to vector<8x32xf32>
    %214 = vector.shape_cast %208 : vector<8x32xf32> to vector<1x8x32xf32>
    tpu.vector_store %arg10[%c0_55, %c0_56, %c0_57], %214 {strides = array<i32>} : memref<2x8x32xf32, #tpu.memory_space<vmem>>, vector<1x8x32xf32>,
    %c0_58 = arith.constant 0 : index
    %c0_59 = arith.constant 0 : index
    %c0_60 = arith.constant 0 : index
    %215 = vector.load %arg11[%c0_58, %c0_59, %c0_60] : memref<2x8x32xf32, #tpu.memory_space<vmem>>, vector<1x8x32xf32>
    %216 = vector.shape_cast %215 : vector<1x8x32xf32> to vector<8x32xf32>
    %217 = vector.shape_cast %206 : vector<8x32xf32> to vector<1x8x32xf32>
    tpu.vector_store %arg11[%c0_58, %c0_59, %c0_60], %217 {strides = array<i32>} : memref<2x8x32xf32, #tpu.memory_space<vmem>>, vector<1x8x32xf32>,
    %c0_61 = arith.constant 0 : index
    %c0_62 = arith.constant 0 : index
    %218 = vector.load %arg9[%c0_61, %c0_62] : memref<64x32xbf16, #tpu.memory_space<vmem>>, vector<64x32xbf16>
    %c0_63 = arith.constant 0 : index
    %c0_64 = arith.constant 0 : index
    %219 = vector.load %arg6[%c0_63, %c0_64] : memref<32x128xbf16, #tpu.memory_space<vmem>>, vector<32x128xbf16>
    %cst_65 = arith.constant dense<0.000000e+00> : vector<64x128xf32>
    %220 = tpu.matmul %218, %219, %cst_65 {dimension_numbers = #tpu.dot_dimension_numbers<[1], [0], [0], [1], [0, 0, 1, 1], [], []>} : vector<64x32xbf16>, vector<32x128xbf16>, vector<64x128xf32> -> vector<64x128xf32>
    %c0_66 = arith.constant 0 : index
    %c0_67 = arith.constant 0 : index
    %221 = vector.load %arg8[%c0_66, %c0_67] : memref<1x128xf32, #tpu.memory_space<vmem>>, vector<1x128xf32>
    %222 = vector.broadcast %221 : vector<1x128xf32> to vector<64x128xf32>
    %223 = arith.addf %220, %222 : vector<64x128xf32>
    %c0_68 = arith.constant 0 : index
    %c0_69 = arith.constant 0 : index
    %224 = vector.load %arg12[%c0_68, %c0_69] : memref<64x128xf32, #tpu.memory_space<vmem>>, vector<64x128xf32>
    tpu.vector_store %arg12[%c0_68, %c0_69], %223 {strides = array<i32>} : memref<64x128xf32, #tpu.memory_space<vmem>>, vector<64x128xf32>,
    %c0_70 = arith.constant 0 : index
    %c0_71 = arith.constant 0 : index
    %225 = vector.load %arg7[%c0_70, %c0_71] : memref<32x128xf32, #tpu.memory_space<vmem>>, vector<32x128xf32>
    %c1 = arith.constant 1 : index
    %c0_72 = arith.constant 0 : index
    %c0_73 = arith.constant 0 : index
    %226 = vector.load %arg1[%c1, %c0_72, %c0_73] : memref<2x8x32xf32, #tpu.memory_space<vmem>>, vector<1x8x32xf32>
    %227 = vector.shape_cast %226 : vector<1x8x32xf32> to vector<8x32xf32>
    %c1_74 = arith.constant 1 : index
    %c0_75 = arith.constant 0 : index
    %c0_76 = arith.constant 0 : index
    %228 = vector.load %arg2[%c1_74, %c0_75, %c0_76] : memref<2x8x32xf32, #tpu.memory_space<vmem>>, vector<1x8x32xf32>
    %229 = vector.shape_cast %228 : vector<1x8x32xf32> to vector<8x32xf32>
    %c0_i32_77 = arith.constant 0 : i32
    %c8_i32_78 = arith.constant 8 : i32
    %230 = arith.muli %c0_i32_77, %c8_i32_78 : i32
    %231 = tpu.assume_multiple %230, 8 : i32
    %232 = arith.index_cast %231 : i32 to index
    %c0_79 = arith.constant 0 : index
    %233 = vector.load %arg12[%232, %c0_79] : memref<64x128xf32, #tpu.memory_space<vmem>>, vector<8x128xf32>
    %cst_80 = arith.constant dense<0.000000e+00> : vector<8x128xf32>
    %234 = tpu.matmul %227, %225, %cst_80 {dimension_numbers = #tpu.dot_dimension_numbers<[1], [0], [0], [1], [0, 0, 1, 1], [], []>} : vector<8x32xf32>, vector<32x128xf32>, vector<8x128xf32> -> vector<8x128xf32>
    %235 = arith.addf %233, %234 : vector<8x128xf32>
    %236 = vector.extract_strided_slice %235 {offsets = [0, 0], sizes = [8, 96], strides = [1, 1]} : vector<8x128xf32> to vector<8x96xf32>
    %237 = arith.negf %236 : vector<8x96xf32>
    %238 = math.exp %237 : vector<8x96xf32>
    %cst_81 = arith.constant 1.000000e+00 : f32
    %239 = vector.broadcast %cst_81 : f32 to vector<8x96xf32>
    %240 = arith.addf %239, %238 : vector<8x96xf32>
    %241 = arith.divf %239, %240 : vector<8x96xf32>
    %242 = vector.extract_strided_slice %235 {offsets = [0, 96], sizes = [8, 32], strides = [1, 1]} : vector<8x128xf32> to vector<8x32xf32>
    %243 = math.tanh %242 : vector<8x32xf32>
    %244 = vector.extract_strided_slice %241 {offsets = [0, 0], sizes = [8, 32], strides = [1, 1]} : vector<8x96xf32> to vector<8x32xf32>
    %245 = vector.extract_strided_slice %241 {offsets = [0, 32], sizes = [8, 32], strides = [1, 1]} : vector<8x96xf32> to vector<8x32xf32>
    %246 = vector.extract_strided_slice %241 {offsets = [0, 64], sizes = [8, 32], strides = [1, 1]} : vector<8x96xf32> to vector<8x32xf32>
    %247 = arith.mulf %245, %229 : vector<8x32xf32>
    %248 = arith.mulf %244, %243 : vector<8x32xf32>
    %249 = arith.addf %247, %248 : vector<8x32xf32>
    %250 = math.tanh %249 : vector<8x32xf32>
    %251 = arith.mulf %246, %250 : vector<8x32xf32>
    %252 = arith.truncf %251 : vector<8x32xf32> to vector<8x32xbf16>
    %253 = arith.index_cast %231 : i32 to index
    %c0_82 = arith.constant 0 : index
    %254 = vector.load %arg9[%253, %c0_82] : memref<64x32xbf16, #tpu.memory_space<vmem>>, vector<8x32xbf16>
    tpu.vector_store %arg9[%253, %c0_82], %252 {strides = array<i32>} : memref<64x32xbf16, #tpu.memory_space<vmem>>, vector<8x32xbf16>,
    %c1_i32_83 = arith.constant 1 : i32
    %c8_i32_84 = arith.constant 8 : i32
    %255 = arith.muli %c1_i32_83, %c8_i32_84 : i32
    %256 = tpu.assume_multiple %255, 8 : i32
    %257 = arith.index_cast %256 : i32 to index
    %c0_85 = arith.constant 0 : index
    %258 = vector.load %arg12[%257, %c0_85] : memref<64x128xf32, #tpu.memory_space<vmem>>, vector<8x128xf32>
    %cst_86 = arith.constant dense<0.000000e+00> : vector<8x128xf32>
    %259 = tpu.matmul %251, %225, %cst_86 {dimension_numbers = #tpu.dot_dimension_numbers<[1], [0], [0], [1], [0, 0, 1, 1], [], []>} : vector<8x32xf32>, vector<32x128xf32>, vector<8x128xf32> -> vector<8x128xf32>
    %260 = arith.addf %258, %259 : vector<8x128xf32>
    %261 = vector.extract_strided_slice %260 {offsets = [0, 0], sizes = [8, 96], strides = [1, 1]} : vector<8x128xf32> to vector<8x96xf32>
    %262 = arith.negf %261 : vector<8x96xf32>
    %263 = math.exp %262 : vector<8x96xf32>
    %cst_87 = arith.constant 1.000000e+00 : f32
    %264 = vector.broadcast %cst_87 : f32 to vector<8x96xf32>
    %265 = arith.addf %264, %263 : vector<8x96xf32>
    %266 = arith.divf %264, %265 : vector<8x96xf32>
    %267 = vector.extract_strided_slice %260 {offsets = [0, 96], sizes = [8, 32], strides = [1, 1]} : vector<8x128xf32> to vector<8x32xf32>
    %268 = math.tanh %267 : vector<8x32xf32>
    %269 = vector.extract_strided_slice %266 {offsets = [0, 0], sizes = [8, 32], strides = [1, 1]} : vector<8x96xf32> to vector<8x32xf32>
    %270 = vector.extract_strided_slice %266 {offsets = [0, 32], sizes = [8, 32], strides = [1, 1]} : vector<8x96xf32> to vector<8x32xf32>
    %271 = vector.extract_strided_slice %266 {offsets = [0, 64], sizes = [8, 32], strides = [1, 1]} : vector<8x96xf32> to vector<8x32xf32>
    %272 = arith.mulf %270, %249 : vector<8x32xf32>
    %273 = arith.mulf %269, %268 : vector<8x32xf32>
    %274 = arith.addf %272, %273 : vector<8x32xf32>
    %275 = math.tanh %274 : vector<8x32xf32>
    %276 = arith.mulf %271, %275 : vector<8x32xf32>
    %277 = arith.truncf %276 : vector<8x32xf32> to vector<8x32xbf16>
    %278 = arith.index_cast %256 : i32 to index
    %c0_88 = arith.constant 0 : index
    %279 = vector.load %arg9[%278, %c0_88] : memref<64x32xbf16, #tpu.memory_space<vmem>>, vector<8x32xbf16>
    tpu.vector_store %arg9[%278, %c0_88], %277 {strides = array<i32>} : memref<64x32xbf16, #tpu.memory_space<vmem>>, vector<8x32xbf16>,
    %c2_i32_89 = arith.constant 2 : i32
    %c8_i32_90 = arith.constant 8 : i32
    %280 = arith.muli %c2_i32_89, %c8_i32_90 : i32
    %281 = tpu.assume_multiple %280, 8 : i32
    %282 = arith.index_cast %281 : i32 to index
    %c0_91 = arith.constant 0 : index
    %283 = vector.load %arg12[%282, %c0_91] : memref<64x128xf32, #tpu.memory_space<vmem>>, vector<8x128xf32>
    %cst_92 = arith.constant dense<0.000000e+00> : vector<8x128xf32>
    %284 = tpu.matmul %276, %225, %cst_92 {dimension_numbers = #tpu.dot_dimension_numbers<[1], [0], [0], [1], [0, 0, 1, 1], [], []>} : vector<8x32xf32>, vector<32x128xf32>, vector<8x128xf32> -> vector<8x128xf32>
    %285 = arith.addf %283, %284 : vector<8x128xf32>
    %286 = vector.extract_strided_slice %285 {offsets = [0, 0], sizes = [8, 96], strides = [1, 1]} : vector<8x128xf32> to vector<8x96xf32>
    %287 = arith.negf %286 : vector<8x96xf32>
    %288 = math.exp %287 : vector<8x96xf32>
    %cst_93 = arith.constant 1.000000e+00 : f32
    %289 = vector.broadcast %cst_93 : f32 to vector<8x96xf32>
    %290 = arith.addf %289, %288 : vector<8x96xf32>
    %291 = arith.divf %289, %290 : vector<8x96xf32>
    %292 = vector.extract_strided_slice %285 {offsets = [0, 96], sizes = [8, 32], strides = [1, 1]} : vector<8x128xf32> to vector<8x32xf32>
    %293 = math.tanh %292 : vector<8x32xf32>
    %294 = vector.extract_strided_slice %291 {offsets = [0, 0], sizes = [8, 32], strides = [1, 1]} : vector<8x96xf32> to vector<8x32xf32>
    %295 = vector.extract_strided_slice %291 {offsets = [0, 32], sizes = [8, 32], strides = [1, 1]} : vector<8x96xf32> to vector<8x32xf32>
    %296 = vector.extract_strided_slice %291 {offsets = [0, 64], sizes = [8, 32], strides = [1, 1]} : vector<8x96xf32> to vector<8x32xf32>
    %297 = arith.mulf %295, %274 : vector<8x32xf32>
    %298 = arith.mulf %294, %293 : vector<8x32xf32>
    %299 = arith.addf %297, %298 : vector<8x32xf32>
    %300 = math.tanh %299 : vector<8x32xf32>
    %301 = arith.mulf %296, %300 : vector<8x32xf32>
    %302 = arith.truncf %301 : vector<8x32xf32> to vector<8x32xbf16>
    %303 = arith.index_cast %281 : i32 to index
    %c0_94 = arith.constant 0 : index
    %304 = vector.load %arg9[%303, %c0_94] : memref<64x32xbf16, #tpu.memory_space<vmem>>, vector<8x32xbf16>
    tpu.vector_store %arg9[%303, %c0_94], %302 {strides = array<i32>} : memref<64x32xbf16, #tpu.memory_space<vmem>>, vector<8x32xbf16>,
    %c3_i32_95 = arith.constant 3 : i32
    %c8_i32_96 = arith.constant 8 : i32
    %305 = arith.muli %c3_i32_95, %c8_i32_96 : i32
    %306 = tpu.assume_multiple %305, 8 : i32
    %307 = arith.index_cast %306 : i32 to index
    %c0_97 = arith.constant 0 : index
    %308 = vector.load %arg12[%307, %c0_97] : memref<64x128xf32, #tpu.memory_space<vmem>>, vector<8x128xf32>
    %cst_98 = arith.constant dense<0.000000e+00> : vector<8x128xf32>
    %309 = tpu.matmul %301, %225, %cst_98 {dimension_numbers = #tpu.dot_dimension_numbers<[1], [0], [0], [1], [0, 0, 1, 1], [], []>} : vector<8x32xf32>, vector<32x128xf32>, vector<8x128xf32> -> vector<8x128xf32>
    %310 = arith.addf %308, %309 : vector<8x128xf32>
    %311 = vector.extract_strided_slice %310 {offsets = [0, 0], sizes = [8, 96], strides = [1, 1]} : vector<8x128xf32> to vector<8x96xf32>
    %312 = arith.negf %311 : vector<8x96xf32>
    %313 = math.exp %312 : vector<8x96xf32>
    %cst_99 = arith.constant 1.000000e+00 : f32
    %314 = vector.broadcast %cst_99 : f32 to vector<8x96xf32>
    %315 = arith.addf %314, %313 : vector<8x96xf32>
    %316 = arith.divf %314, %315 : vector<8x96xf32>
    %317 = vector.extract_strided_slice %310 {offsets = [0, 96], sizes = [8, 32], strides = [1, 1]} : vector<8x128xf32> to vector<8x32xf32>
    %318 = math.tanh %317 : vector<8x32xf32>
    %319 = vector.extract_strided_slice %316 {offsets = [0, 0], sizes = [8, 32], strides = [1, 1]} : vector<8x96xf32> to vector<8x32xf32>
    %320 = vector.extract_strided_slice %316 {offsets = [0, 32], sizes = [8, 32], strides = [1, 1]} : vector<8x96xf32> to vector<8x32xf32>
    %321 = vector.extract_strided_slice %316 {offsets = [0, 64], sizes = [8, 32], strides = [1, 1]} : vector<8x96xf32> to vector<8x32xf32>
    %322 = arith.mulf %320, %299 : vector<8x32xf32>
    %323 = arith.mulf %319, %318 : vector<8x32xf32>
    %324 = arith.addf %322, %323 : vector<8x32xf32>
    %325 = math.tanh %324 : vector<8x32xf32>
    %326 = arith.mulf %321, %325 : vector<8x32xf32>
    %327 = arith.truncf %326 : vector<8x32xf32> to vector<8x32xbf16>
    %328 = arith.index_cast %306 : i32 to index
    %c0_100 = arith.constant 0 : index
    %329 = vector.load %arg9[%328, %c0_100] : memref<64x32xbf16, #tpu.memory_space<vmem>>, vector<8x32xbf16>
    tpu.vector_store %arg9[%328, %c0_100], %327 {strides = array<i32>} : memref<64x32xbf16, #tpu.memory_space<vmem>>, vector<8x32xbf16>,
    %c4_i32_101 = arith.constant 4 : i32
    %c8_i32_102 = arith.constant 8 : i32
    %330 = arith.muli %c4_i32_101, %c8_i32_102 : i32
    %331 = tpu.assume_multiple %330, 8 : i32
    %332 = arith.index_cast %331 : i32 to index
    %c0_103 = arith.constant 0 : index
    %333 = vector.load %arg12[%332, %c0_103] : memref<64x128xf32, #tpu.memory_space<vmem>>, vector<8x128xf32>
    %cst_104 = arith.constant dense<0.000000e+00> : vector<8x128xf32>
    %334 = tpu.matmul %326, %225, %cst_104 {dimension_numbers = #tpu.dot_dimension_numbers<[1], [0], [0], [1], [0, 0, 1, 1], [], []>} : vector<8x32xf32>, vector<32x128xf32>, vector<8x128xf32> -> vector<8x128xf32>
    %335 = arith.addf %333, %334 : vector<8x128xf32>
    %336 = vector.extract_strided_slice %335 {offsets = [0, 0], sizes = [8, 96], strides = [1, 1]} : vector<8x128xf32> to vector<8x96xf32>
    %337 = arith.negf %336 : vector<8x96xf32>
    %338 = math.exp %337 : vector<8x96xf32>
    %cst_105 = arith.constant 1.000000e+00 : f32
    %339 = vector.broadcast %cst_105 : f32 to vector<8x96xf32>
    %340 = arith.addf %339, %338 : vector<8x96xf32>
    %341 = arith.divf %339, %340 : vector<8x96xf32>
    %342 = vector.extract_strided_slice %335 {offsets = [0, 96], sizes = [8, 32], strides = [1, 1]} : vector<8x128xf32> to vector<8x32xf32>
    %343 = math.tanh %342 : vector<8x32xf32>
    %344 = vector.extract_strided_slice %341 {offsets = [0, 0], sizes = [8, 32], strides = [1, 1]} : vector<8x96xf32> to vector<8x32xf32>
    %345 = vector.extract_strided_slice %341 {offsets = [0, 32], sizes = [8, 32], strides = [1, 1]} : vector<8x96xf32> to vector<8x32xf32>
    %346 = vector.extract_strided_slice %341 {offsets = [0, 64], sizes = [8, 32], strides = [1, 1]} : vector<8x96xf32> to vector<8x32xf32>
    %347 = arith.mulf %345, %324 : vector<8x32xf32>
    %348 = arith.mulf %344, %343 : vector<8x32xf32>
    %349 = arith.addf %347, %348 : vector<8x32xf32>
    %350 = math.tanh %349 : vector<8x32xf32>
    %351 = arith.mulf %346, %350 : vector<8x32xf32>
    %352 = arith.truncf %351 : vector<8x32xf32> to vector<8x32xbf16>
    %353 = arith.index_cast %331 : i32 to index
    %c0_106 = arith.constant 0 : index
    %354 = vector.load %arg9[%353, %c0_106] : memref<64x32xbf16, #tpu.memory_space<vmem>>, vector<8x32xbf16>
    tpu.vector_store %arg9[%353, %c0_106], %352 {strides = array<i32>} : memref<64x32xbf16, #tpu.memory_space<vmem>>, vector<8x32xbf16>,
    %c5_i32_107 = arith.constant 5 : i32
    %c8_i32_108 = arith.constant 8 : i32
    %355 = arith.muli %c5_i32_107, %c8_i32_108 : i32
    %356 = tpu.assume_multiple %355, 8 : i32
    %357 = arith.index_cast %356 : i32 to index
    %c0_109 = arith.constant 0 : index
    %358 = vector.load %arg12[%357, %c0_109] : memref<64x128xf32, #tpu.memory_space<vmem>>, vector<8x128xf32>
    %cst_110 = arith.constant dense<0.000000e+00> : vector<8x128xf32>
    %359 = tpu.matmul %351, %225, %cst_110 {dimension_numbers = #tpu.dot_dimension_numbers<[1], [0], [0], [1], [0, 0, 1, 1], [], []>} : vector<8x32xf32>, vector<32x128xf32>, vector<8x128xf32> -> vector<8x128xf32>
    %360 = arith.addf %358, %359 : vector<8x128xf32>
    %361 = vector.extract_strided_slice %360 {offsets = [0, 0], sizes = [8, 96], strides = [1, 1]} : vector<8x128xf32> to vector<8x96xf32>
    %362 = arith.negf %361 : vector<8x96xf32>
    %363 = math.exp %362 : vector<8x96xf32>
    %cst_111 = arith.constant 1.000000e+00 : f32
    %364 = vector.broadcast %cst_111 : f32 to vector<8x96xf32>
    %365 = arith.addf %364, %363 : vector<8x96xf32>
    %366 = arith.divf %364, %365 : vector<8x96xf32>
    %367 = vector.extract_strided_slice %360 {offsets = [0, 96], sizes = [8, 32], strides = [1, 1]} : vector<8x128xf32> to vector<8x32xf32>
    %368 = math.tanh %367 : vector<8x32xf32>
    %369 = vector.extract_strided_slice %366 {offsets = [0, 0], sizes = [8, 32], strides = [1, 1]} : vector<8x96xf32> to vector<8x32xf32>
    %370 = vector.extract_strided_slice %366 {offsets = [0, 32], sizes = [8, 32], strides = [1, 1]} : vector<8x96xf32> to vector<8x32xf32>
    %371 = vector.extract_strided_slice %366 {offsets = [0, 64], sizes = [8, 32], strides = [1, 1]} : vector<8x96xf32> to vector<8x32xf32>
    %372 = arith.mulf %370, %349 : vector<8x32xf32>
    %373 = arith.mulf %369, %368 : vector<8x32xf32>
    %374 = arith.addf %372, %373 : vector<8x32xf32>
    %375 = math.tanh %374 : vector<8x32xf32>
    %376 = arith.mulf %371, %375 : vector<8x32xf32>
    %377 = arith.truncf %376 : vector<8x32xf32> to vector<8x32xbf16>
    %378 = arith.index_cast %356 : i32 to index
    %c0_112 = arith.constant 0 : index
    %379 = vector.load %arg9[%378, %c0_112] : memref<64x32xbf16, #tpu.memory_space<vmem>>, vector<8x32xbf16>
    tpu.vector_store %arg9[%378, %c0_112], %377 {strides = array<i32>} : memref<64x32xbf16, #tpu.memory_space<vmem>>, vector<8x32xbf16>,
    %c6_i32_113 = arith.constant 6 : i32
    %c8_i32_114 = arith.constant 8 : i32
    %380 = arith.muli %c6_i32_113, %c8_i32_114 : i32
    %381 = tpu.assume_multiple %380, 8 : i32
    %382 = arith.index_cast %381 : i32 to index
    %c0_115 = arith.constant 0 : index
    %383 = vector.load %arg12[%382, %c0_115] : memref<64x128xf32, #tpu.memory_space<vmem>>, vector<8x128xf32>
    %cst_116 = arith.constant dense<0.000000e+00> : vector<8x128xf32>
    %384 = tpu.matmul %376, %225, %cst_116 {dimension_numbers = #tpu.dot_dimension_numbers<[1], [0], [0], [1], [0, 0, 1, 1], [], []>} : vector<8x32xf32>, vector<32x128xf32>, vector<8x128xf32> -> vector<8x128xf32>
    %385 = arith.addf %383, %384 : vector<8x128xf32>
    %386 = vector.extract_strided_slice %385 {offsets = [0, 0], sizes = [8, 96], strides = [1, 1]} : vector<8x128xf32> to vector<8x96xf32>
    %387 = arith.negf %386 : vector<8x96xf32>
    %388 = math.exp %387 : vector<8x96xf32>
    %cst_117 = arith.constant 1.000000e+00 : f32
    %389 = vector.broadcast %cst_117 : f32 to vector<8x96xf32>
    %390 = arith.addf %389, %388 : vector<8x96xf32>
    %391 = arith.divf %389, %390 : vector<8x96xf32>
    %392 = vector.extract_strided_slice %385 {offsets = [0, 96], sizes = [8, 32], strides = [1, 1]} : vector<8x128xf32> to vector<8x32xf32>
    %393 = math.tanh %392 : vector<8x32xf32>
    %394 = vector.extract_strided_slice %391 {offsets = [0, 0], sizes = [8, 32], strides = [1, 1]} : vector<8x96xf32> to vector<8x32xf32>
    %395 = vector.extract_strided_slice %391 {offsets = [0, 32], sizes = [8, 32], strides = [1, 1]} : vector<8x96xf32> to vector<8x32xf32>
    %396 = vector.extract_strided_slice %391 {offsets = [0, 64], sizes = [8, 32], strides = [1, 1]} : vector<8x96xf32> to vector<8x32xf32>
    %397 = arith.mulf %395, %374 : vector<8x32xf32>
    %398 = arith.mulf %394, %393 : vector<8x32xf32>
    %399 = arith.addf %397, %398 : vector<8x32xf32>
    %400 = math.tanh %399 : vector<8x32xf32>
    %401 = arith.mulf %396, %400 : vector<8x32xf32>
    %402 = arith.truncf %401 : vector<8x32xf32> to vector<8x32xbf16>
    %403 = arith.index_cast %381 : i32 to index
    %c0_118 = arith.constant 0 : index
    %404 = vector.load %arg9[%403, %c0_118] : memref<64x32xbf16, #tpu.memory_space<vmem>>, vector<8x32xbf16>
    tpu.vector_store %arg9[%403, %c0_118], %402 {strides = array<i32>} : memref<64x32xbf16, #tpu.memory_space<vmem>>, vector<8x32xbf16>,
    %c7_i32_119 = arith.constant 7 : i32
    %c8_i32_120 = arith.constant 8 : i32
    %405 = arith.muli %c7_i32_119, %c8_i32_120 : i32
    %406 = tpu.assume_multiple %405, 8 : i32
    %407 = arith.index_cast %406 : i32 to index
    %c0_121 = arith.constant 0 : index
    %408 = vector.load %arg12[%407, %c0_121] : memref<64x128xf32, #tpu.memory_space<vmem>>, vector<8x128xf32>
    %cst_122 = arith.constant dense<0.000000e+00> : vector<8x128xf32>
    %409 = tpu.matmul %401, %225, %cst_122 {dimension_numbers = #tpu.dot_dimension_numbers<[1], [0], [0], [1], [0, 0, 1, 1], [], []>} : vector<8x32xf32>, vector<32x128xf32>, vector<8x128xf32> -> vector<8x128xf32>
    %410 = arith.addf %408, %409 : vector<8x128xf32>
    %411 = vector.extract_strided_slice %410 {offsets = [0, 0], sizes = [8, 96], strides = [1, 1]} : vector<8x128xf32> to vector<8x96xf32>
    %412 = arith.negf %411 : vector<8x96xf32>
    %413 = math.exp %412 : vector<8x96xf32>
    %cst_123 = arith.constant 1.000000e+00 : f32
    %414 = vector.broadcast %cst_123 : f32 to vector<8x96xf32>
    %415 = arith.addf %414, %413 : vector<8x96xf32>
    %416 = arith.divf %414, %415 : vector<8x96xf32>
    %417 = vector.extract_strided_slice %410 {offsets = [0, 96], sizes = [8, 32], strides = [1, 1]} : vector<8x128xf32> to vector<8x32xf32>
    %418 = math.tanh %417 : vector<8x32xf32>
    %419 = vector.extract_strided_slice %416 {offsets = [0, 0], sizes = [8, 32], strides = [1, 1]} : vector<8x96xf32> to vector<8x32xf32>
    %420 = vector.extract_strided_slice %416 {offsets = [0, 32], sizes = [8, 32], strides = [1, 1]} : vector<8x96xf32> to vector<8x32xf32>
    %421 = vector.extract_strided_slice %416 {offsets = [0, 64], sizes = [8, 32], strides = [1, 1]} : vector<8x96xf32> to vector<8x32xf32>
    %422 = arith.mulf %420, %399 : vector<8x32xf32>
    %423 = arith.mulf %419, %418 : vector<8x32xf32>
    %424 = arith.addf %422, %423 : vector<8x32xf32>
    %425 = math.tanh %424 : vector<8x32xf32>
    %426 = arith.mulf %421, %425 : vector<8x32xf32>
    %427 = arith.truncf %426 : vector<8x32xf32> to vector<8x32xbf16>
    %428 = arith.index_cast %406 : i32 to index
    %c0_124 = arith.constant 0 : index
    %429 = vector.load %arg9[%428, %c0_124] : memref<64x32xbf16, #tpu.memory_space<vmem>>, vector<8x32xbf16>
    tpu.vector_store %arg9[%428, %c0_124], %427 {strides = array<i32>} : memref<64x32xbf16, #tpu.memory_space<vmem>>, vector<8x32xbf16>,
    %c8_i32_125 = arith.constant 8 : i32
    %c1_126 = arith.constant 1 : index
    %c0_127 = arith.constant 0 : index
    %c0_128 = arith.constant 0 : index
    %430 = vector.load %arg10[%c1_126, %c0_127, %c0_128] : memref<2x8x32xf32, #tpu.memory_space<vmem>>, vector<1x8x32xf32>
    %431 = vector.shape_cast %430 : vector<1x8x32xf32> to vector<8x32xf32>
    %432 = vector.shape_cast %426 : vector<8x32xf32> to vector<1x8x32xf32>
    tpu.vector_store %arg10[%c1_126, %c0_127, %c0_128], %432 {strides = array<i32>} : memref<2x8x32xf32, #tpu.memory_space<vmem>>, vector<1x8x32xf32>,
    %c1_129 = arith.constant 1 : index
    %c0_130 = arith.constant 0 : index
    %c0_131 = arith.constant 0 : index
    %433 = vector.load %arg11[%c1_129, %c0_130, %c0_131] : memref<2x8x32xf32, #tpu.memory_space<vmem>>, vector<1x8x32xf32>
    %434 = vector.shape_cast %433 : vector<1x8x32xf32> to vector<8x32xf32>
    %435 = vector.shape_cast %424 : vector<8x32xf32> to vector<1x8x32xf32>
    tpu.vector_store %arg11[%c1_129, %c0_130, %c0_131], %435 {strides = array<i32>} : memref<2x8x32xf32, #tpu.memory_space<vmem>>, vector<1x8x32xf32>,
    return
  }
}

</mosaic_0001>

<bundles_post_ra>
// kernel: tpu_custom_call.1
= control target key start
LH: loop header
LB: loop body
LE: loop exit
PB: predicated region body
PF: predicated region fallthrough
CT: control target
= control target key end

     0   :  { %17 = vsyncpa [#allocation4], 0  ;;  %s3628_s0 = inlined_call_operand.vmem [shape: bf16[64,32], index: 0, kind: input, shape index: {}]   ;;  %s3629_s1 = inlined_call_operand.hbm [shape: f32[2,8,32], index: 1, kind: input, shape index: {}]   ;;  %s3630_s2 = inlined_call_operand.hbm [shape: f32[2,8,32], index: 2, kind: input, shape index: {}]   ;;  %s3631_s3 = inlined_call_operand.hbm [shape: bf16[32,128], index: 3, kind: input, shape index: {}]   ;;  %s3632_s4 = inlined_call_operand.vmem [shape: f32[32,128], index: 4, kind: input, shape index: {}]   ;;  %s3633_s5 = inlined_call_operand.vmem [shape: f32[1,128], index: 5, kind: input, shape index: {}]   ;;  %s3634_s6 = inlined_call_operand.hbm [shape: bf16[32,128], index: 6, kind: input, shape index: {}]   ;;  %s3635_s7 = inlined_call_operand.vmem [shape: f32[32,128], index: 7, kind: input, shape index: {}]   ;;  %s3636_s8 = inlined_call_operand.vmem [shape: f32[1,128], index: 8, kind: input, shape index: {}]   ;;  %s3637_s9 = inlined_call_operand.vmem [shape: bf16[64,32], index: 9, kind: output, shape index: {0}]   ;;  %s3638_s10 = inlined_call_operand.hbm [shape: f32[2,8,32], index: 10, kind: output, shape index: {1}]   ;;  %s3639_s11 = inlined_call_operand.hbm [shape: f32[2,8,32], index: 11, kind: output, shape index: {2}]  }
   0x1   :  { %18 = vsyncpa [#allocation7], 0 }
   0x2   :  { %19 = vsyncpa [#allocation10], 0 }
   0x3   :  { %20 = vsyncpa [#allocation5], 0 }
   0x4   :  { %21 = vsyncpa [#allocation13], 0  ;;  %s2989_s17 = smov [#allocation6]   ;;  %s2990_s19 = smov [#allocation3]  }
   0x5   :  { %s41_s18 = sshll.u32 %s2989_s17, 4  ;;  %s29_s20 = sshll.u32 %s2990_s19, 4  ;;  %s42_s18 = int_to_ptr.vmem [resolvable:$true] %s41_s18  ;;  %s3064_s20 = int_to_ptr.vmem [resolvable:$true] %s29_s20 }
   0x6   :  { %s2847_s23 = scalar_lea.hbm %s3630_s2, 256 }
   0x7   :  { %p2848_p0 = scmp.ne.s32.totalorder %s3630_s2, %s2847_s23  ;;  %p2851_p1 = scmp.lt.u32.totalorder %s2847_s23, %s3630_s2 }
   0x9   :  { %p2853_p2 = pnand %p2851_p1, %p2848_p0 }
   0xb   :  { %2856 = shalt.err (!%p2853_p2)
}
   0xc   :  { %s2857_s28 = scalar_lea.vmem %s42_s18, 256  ;;  %p2862_p4 = scmp.lt.s32.totalorder %s42_s18, %s42_s18 }
   0xd   :  { %p2858_p3 = scmp.ne.s32.totalorder %s42_s18, %s2857_s28  ;;  %p2863_p5 = scmp.lt.s32.totalorder %s2857_s28, %s2857_s28 }
   0xf   :  { %p2864_p6 = por %p2863_p5, %p2862_p4 }
  0x11   :  { %p2865_p7 = pnand %p2864_p6, %p2858_p3 }
  0x13   :  { %2868 = shalt.err (!%p2865_p7)
}
  0x14   :  { %s2991_s29 = smov 128   ;;  %s2992_s30 = smov 8  }
  0x15   :  { %47 = dma.hbm_to_vmem [thread:$0]  %s3630_s2, 256, %s42_s18, [#allocation7], %s2991_s29, %s2991_s29, %s2992_s30  }
  0x16   :  { %s2869_s16 = scalar_lea.hbm %s3629_s1, 256 }
  0x17   :  { %p2870_p8 = scmp.ne.s32.totalorder %s3629_s1, %s2869_s16  ;;  %p2873_p9 = scmp.lt.u32.totalorder %s2869_s16, %s3629_s1 }
  0x19   :  { %p2875_p10 = pnand %p2873_p9, %p2870_p8 }
  0x1b   :  { %2878 = shalt.err (!%p2875_p10)
}
  0x1c   :  { %s2879_s23 = scalar_lea.vmem %s3064_s20, 256  ;;  %p2884_p12 = scmp.lt.s32.totalorder %s3064_s20, %s3064_s20 }
  0x1d   :  { %p2880_p11 = scmp.ne.s32.totalorder %s3064_s20, %s2879_s23  ;;  %p2885_p13 = scmp.lt.s32.totalorder %s2879_s23, %s2879_s23 }
  0x1f   :  { %p2886_p0 = por %p2885_p13, %p2884_p12 }
  0x21   :  { %p2887_p1 = pnand %p2886_p0, %p2880_p11 }
  0x23   :  { %2890 = shalt.err (!%p2887_p1)
}
  0x24   :  { %35 = dma.hbm_to_vmem [thread:$0]  %s3629_s1, 256, %s3064_s20, [#allocation4], %s2991_s29, %s2991_s29, %s2992_s30  }
  0x25   :  { %s2993_s24 = smov [#allocation8]   ;;  %s2891_s28 = scalar_lea.hbm %s3631_s3, 256 }
  0x26   :  { %s53_s25 = sshll.u32 %s2993_s24, 4  ;;  %p2892_p2 = scmp.ne.s32.totalorder %s3631_s3, %s2891_s28  ;;  %s54_s25 = int_to_ptr.vmem [resolvable:$true] %s53_s25 }
  0x27   :  { %p2895_p3 = scmp.lt.u32.totalorder %s2891_s28, %s3631_s3 }
  0x29   :  { %p2897_p4 = pnand %p2895_p3, %p2892_p2 }
  0x2b   :  { %2900 = shalt.err (!%p2897_p4)
}
  0x2c   :  { %s2901_s16 = scalar_lea.vmem %s54_s25, 256  ;;  %p2906_p6 = scmp.lt.s32.totalorder %s54_s25, %s54_s25 }
  0x2d   :  { %p2902_p5 = scmp.ne.s32.totalorder %s54_s25, %s2901_s16  ;;  %p2907_p7 = scmp.lt.s32.totalorder %s2901_s16, %s2901_s16 }
  0x2f   :  { %p2908_p8 = por %p2907_p7, %p2906_p6 }
  0x31   :  { %p2909_p9 = pnand %p2908_p8, %p2902_p5 }
  0x33   :  { %2912 = shalt.err (!%p2909_p9)
}
  0x34   :  { %s2994_s1 = smov 64   ;;  %s2995_s20 = smov 4  }
  0x35   :  { %59 = dma.hbm_to_vmem [thread:$0]  %s3631_s3, 256, %s54_s25, [#allocation7], %s2994_s1, %s2994_s1, %s2995_s20  }
  0x36   :  { %s2996_s21 = smov [#allocation9]   ;;  %s2913_s18 = scalar_lea.hbm %s3634_s6, 256 }
  0x37   :  { %s69_s22 = sshll.u32 %s2996_s21, 4  ;;  %p2914_p10 = scmp.ne.s32.totalorder %s3634_s6, %s2913_s18  ;;  %s70_s22 = int_to_ptr.vmem [resolvable:$true] %s69_s22 }
  0x38   :  { %p2917_p11 = scmp.lt.u32.totalorder %s2913_s18, %s3634_s6 }
  0x3a   :  { %p2919_p12 = pnand %p2917_p11, %p2914_p10 }
  0x3c   :  { %2922 = shalt.err (!%p2919_p12)
}
  0x3d   :  { %s2923_s12 = scalar_lea.vmem %s70_s22, 256  ;;  %p2928_p0 = scmp.lt.s32.totalorder %s70_s22, %s70_s22 }
  0x3e   :  { %p2924_p13 = scmp.ne.s32.totalorder %s70_s22, %s2923_s12  ;;  %p2929_p1 = scmp.lt.s32.totalorder %s2923_s12, %s2923_s12 }
  0x40   :  { %p2930_p2 = por %p2929_p1, %p2928_p0 }
  0x42   :  { %p2931_p3 = pnand %p2930_p2, %p2924_p13 }
  0x44   :  { %2934 = shalt.err (!%p2931_p3)
}
  0x45   :  { %75 = dma.hbm_to_vmem [thread:$0]  %s3634_s6, 256, %s70_s22, [#allocation10], %s2994_s1, %s2994_s1, %s2995_s20  }
  0x46   :  { %2979 = dma.done.wait [#allocation4], 256  }
  0x47   :  { %2980 = vsyncadd [#allocation4], 4294967040 }
  0x48   :  { %2981 = dma.done.wait [#allocation7], 512  }
  0x49   :  { %2982 = vsyncadd [#allocation7], 4294966784 }
  0x4a   :  { %2983 = dma.done.wait [#allocation10], 256  }
  0x4b   :  { %2984 = vsyncadd [#allocation10], 4294967040  ;;  %v2997_v0 = vmov 0.0|0.0   ;;  %vm2998_vm0 = vmmov 0   ;;  %v2999_v1 = vmov 0.0   ;;  %v2707_v2 = vld [vmem:[#allocation8] sm:$0xff]  }
  0x4c   :  { %2596 = vmatprep.subr.bf16.mxu1 %v2997_v0  ;;  %2416 = vmatprep.mubr.msk.f32.mxu1 %vm2998_vm0, %v2999_v1  ;;  %v230_v3 = vld [vmem:[%s3632_s4] sm:$0xff]  ;;  %v231_v4 = vld [vmem:[%s3632_s4 + $0x8] sm:$0xff]  ;;  %vm144_vm1 = vcmask 261120   ;;  %v232_v8 = vld [vmem:[%s3632_s4 + $0x10] sm:$0xff]  ;;  %s3000_s24 = smov 32   ;;  %vm346_vm2 = vcmask 257024  }
  0x4d   :  { %2396 = vmatprep.subr.bf16.mxu0 %v2707_v2  ;;  %v3138_v5 = vpack.c.bf16 %v231_v4, %v230_v3  ;;  %v2708_v6 = vld [vmem:[#allocation8 + $0x8] sm:$0xff]   ;;  %v2709_v7 = vld [vmem:[%s3628_s0] sm:$0xff]   ;;  %v233_v9 = vld [vmem:[%s3632_s4 + $0x18] sm:$0xff]  ;;  %s3001_s4 = smov 96  }
  0x4e   :  { %2397 = vmatpush3.bf16.msra.mxu0 %v2707_v2  ;;  %2400 = vmatprep.mubr.msk.bf16.mxu0 %vm144_vm1, %v2709_v7  ;;  %v3152_v10 = vpack.c.bf16 %v233_v9, %v232_v8  ;;  %v2710_v11 = vld [vmem:[%s3628_s0 + $0x8] sm:$0xff]   ;;  %v234_v12 = vld [vmem:[#allocation3] sm:$0xff]  ;;  %v235_v23 = vld [vmem:[#allocation6] sm:$0xff] }
  0x4f   :  { %2598 = vmatpush3.bf16.msra.mxu1 %v3138_v5  ;;  %2398 = vmatprep.subr.bf16.mxu0 %v2708_v6  ;;  %v3175_v13 = vld [vmem:[%s3633_s5] ss:$0 sm:$0xff]  ;;  %v2711_v52 = vld [vmem:[%s3628_s0 + $0x10] sm:$0xff]   ;;  %v2712_v53 = vld [vmem:[%s3628_s0 + $0x18] sm:$0xff]  }
  0x50   :  { %2599 = vmatprep.subr.bf16.mxu1 %v2997_v0 }
  0x52   :  { %2399 = vmatpush3.bf16.msra.mxu0 %v2708_v6 }
  0x53   :  { %2601 = vmatpush3.bf16.msra.mxu1 %v3152_v10  ;;  %2608 = vmatprep.subr.bf16.mxu0 %v2997_v0 }
  0x54   :  { %2602 = vmatprep.subr.bf16.mxu1 %v2997_v0 }
  0x55   :  { %2401 = vmatmul.mubr.msk.bf16.vlgmr.msra.gmra.mrb[0].mxu0 %vm144_vm1, %v2710_v11 }
  0x56   :  { %2417 = vmatmul.mubr.msk.f32.vlgmr.msra.gmra.mrb[0].mxu1 %vm144_vm1, %v234_v12  ;;  %2610 = vmatpush3.bf16.msra.mxu0 %v3138_v5 }
  0x57   :  { %2604 = vmatpush3.bf16.msra.mxu1 %v3138_v5  ;;  %2427 = vmatprep.mubr.msk.f32.mxu1 %vm2998_vm0, %v2999_v1 }
  0x58   :  { %2605 = vmatprep.subr.bf16.mxu1 %v2997_v0  ;;  %2611 = vmatprep.subr.bf16.mxu0 %v2997_v0 }
  0x59   :  { %2404 = vmatprep.mubr.msk.bf16.mxu0 %vm144_vm1, %v2711_v52 }
  0x5a   :  { %2613 = vmatpush3.bf16.msra.mxu0 %v3152_v10 }
  0x5b   :  { %2607 = vmatpush3.bf16.msra.mxu1 %v3152_v10  ;;  %2620 = vmatprep.subr.bf16.mxu0 %v2997_v0 }
  0x5c   :  { %2614 = vmatprep.subr.bf16.mxu1 %v2997_v0 }
  0x5d   :  { %2405 = vmatmul.mubr.msk.bf16.gmra.mrb[4].mxu0 %vm144_vm1, %v2712_v53 }
  0x5e   :  { %2438 = vmatprep.mubr.msk.f32.mxu0 %vm2998_vm0, %v2999_v1 }
 0x128   :  { %v3177_v14 = vpop.f32.mrb[0].mxu0 }
 0x129   :  { %v191_v15 = vpop.f32.mrb[1].mxu0  ;;  %v306_v16 = vpop.f32.mrb[0].mxu1  ;;  %v200_v62 = vadd.f32 %v3177_v14, %v3175_v13 }
 0x12a   :  { %v192_v17 = vadd.f32 %v3175_v13, %v191_v15  ;;  %v3180_v18 = vpop.f32.mrb[2].mxu0  ;;  %v2418_v19 = vpop.f32.mrb[1].mxu1 }
 0x12b   :  { %v194_v20 = vpop.f32.mrb[3].mxu0 }
 0x12c   :  { %v310_v21 = vadd.f32 %v306_v16, %v192_v17  ;;  %v195_v38 = vadd.f32 %v3175_v13, %v194_v20 }
 0x12e   :  { %2719 = vtanh.f32 %v310_v21  ;;  %v2216_v24 = vmul.f32 -1.442695, %v310_v21 }
 0x130   :  { %2721 = vpow2.f32 %v2216_v24  ;;  %v3215_v57 = vpop.f32.mrb[4].mxu0 }
 0x131   :  { %v3217_v58 = vpop.f32.mrb[5].mxu0 }
 0x132   :  { %v3219_v59 = vpop.f32.mrb[6].mxu0 }
 0x133   :  { %v3221_v60 = vpop.f32.mrb[7].mxu0 }
 0x138   :  { %v2720_v22 = vpop.eup %2719 }
 0x139   :  { %324 = vrot.lane.b32.xlu0 %v2720_v22, %s3000_s24  ;;  %v203_v22 = vadd.f32 %v3180_v18, %v3175_v13 }
 0x13a   :  { %v2722_v25 = vpop.eup %2721 }
 0x13b   :  { %v314_v26 = vadd.f32 1.0, %v2722_v25 }
 0x13d   :  { %319 = vrot.lane.b32.xlu0 %v235_v23, %s3000_s24  ;;  %2723 = vrcp.f32 %v314_v26 }
 0x147   :  { %v2724_v27 = vpop.eup %2723 }
 0x1ab   :  { %v325_v28 = vpop.permute.xlu0 %324 }
 0x1ac   :  { %v327_v29 = vmul.f32 %v2724_v27, %v325_v28 }
 0x1ae   :  { %329 = vrot.lane.b32.xlu1 %v327_v29, %s3000_s24 }
 0x1af   :  { %v320_v30 = vpop.permute.xlu0 %319 }
 0x1b0   :  { %v322_v31 = vmul.f32 %v2724_v27, %v320_v30 }
 0x220   :  { %v330_v32 = vpop.permute.xlu1 %329 }
 0x221   :  { %v332_v33 = vadd.f32 %v330_v32, %v322_v31 }
 0x223   :  { %2725 = vtanh.f32 %v332_v33 }
 0x22d   :  { %v2726_v34 = vpop.eup %2725 }
 0x22e   :  { %335 = vrot.lane.b32.xlu1 %v2726_v34, %s3000_s24 }
 0x2a0   :  { %v336_v35 = vpop.permute.xlu1 %335 }
 0x2a1   :  { %v3186_v36 = vmul.f32 %v2724_v27, %v336_v35 }
 0x2a3   :  { %351 = vrot.lane.b32.xlu0 %v3186_v36, %s2994_s1 }
 0x315   :  { %v352_v37 = vpop.permute.xlu0 %351 }
 0x316   :  { %2428 = vmatmul.mubr.msk.f32.vlgmr.msra.gmra.mrb[2].mxu1 %vm144_vm1, %v352_v37 }
 0x317   :  { %2616 = vmatpush3.bf16.msra.mxu1 %v3138_v5  ;;  %2449 = vmatprep.mubr.msk.f32.mxu1 %vm2998_vm0, %v2999_v1 }
 0x318   :  { %2617 = vmatprep.subr.bf16.mxu1 %v2997_v0 }
 0x31b   :  { %2619 = vmatpush3.bf16.msra.mxu1 %v3152_v10 }
 0x31c   :  { %2626 = vmatprep.subr.bf16.mxu1 %v2997_v0 }
 0x3e9   :  { %v421_v39 = vpop.f32.mrb[2].mxu1 }
 0x3ea   :  { %v425_v40 = vadd.f32 %v421_v39, %v195_v38  ;;  %v2429_v41 = vpop.f32.mrb[3].mxu1 }
 0x3ec   :  { %2727 = vtanh.f32 %v425_v40  ;;  %v2219_v43 = vmul.f32 -1.442695, %v425_v40  ;;  %v208_v40 = vadd.f32 %v3175_v13, %v3217_v58 }
 0x3ee   :  { %2729 = vpow2.f32 %v2219_v43 }
 0x3f6   :  { %v2728_v42 = vpop.eup %2727 }
 0x3f7   :  { %435 = vrot.lane.b32.xlu1 %v2728_v42, %s3000_s24 }
 0x3f8   :  { %v2730_v44 = vpop.eup %2729 }
 0x3f9   :  { %v429_v45 = vadd.f32 1.0, %v2730_v44 }
 0x3fb   :  { %2731 = vrcp.f32 %v429_v45 }
 0x405   :  { %v2732_v46 = vpop.eup %2731 }
 0x406   :  { %v433_v49 = vmul.f32 %v2732_v46, %v332_v33 }
 0x469   :  { %v436_v47 = vpop.permute.xlu1 %435 }
 0x46a   :  { %v438_v48 = vmul.f32 %v2732_v46, %v436_v47 }
 0x46c   :  { %440 = vrot.lane.b32.xlu0 %v438_v48, %s3000_s24 }
 0x4de   :  { %v441_v50 = vpop.permute.xlu0 %440 }
 0x4df   :  { %v443_v51 = vadd.f32 %v441_v50, %v433_v49 }
 0x4e1   :  { %2733 = vtanh.f32 %v443_v51 }
 0x4eb   :  { %v2734_v54 = vpop.eup %2733 }
 0x4ec   :  { %446 = vrot.lane.b32.xlu1 %v2734_v54, %s3000_s24 }
 0x55e   :  { %v447_v55 = vpop.permute.xlu1 %446 }
 0x55f   :  { %v3211_v56 = vmul.f32 %v2732_v46, %v447_v55 }
 0x561   :  { %462 = vrot.lane.b32.xlu0 %v3211_v56, %s2994_s1 }
 0x5d3   :  { %v463_v61 = vpop.permute.xlu0 %462 }
 0x5d4   :  { %2439 = vmatmul.mubr.msk.f32.vlgmr.msra.gmra.mrb[8].mxu0 %vm144_vm1, %v463_v61 }
 0x5d5   :  { %2622 = vmatpush3.bf16.msra.mxu0 %v3138_v5  ;;  %2460 = vmatprep.mubr.msk.f32.mxu0 %vm2998_vm0, %v2999_v1 }
 0x5d6   :  { %2623 = vmatprep.subr.bf16.mxu0 %v2997_v0 }
 0x5d9   :  { %2625 = vmatpush3.bf16.msra.mxu0 %v3152_v10 }
 0x5da   :  { %2632 = vmatprep.subr.bf16.mxu0 %v2997_v0 }
 0x6a7   :  { %v532_v63 = vpop.f32.mrb[8].mxu0 }
 0x6a8   :  { %v536_v2 = vadd.f32 %v532_v63, %v200_v62  ;;  %v2440_v3 = vpop.f32.mrb[9].mxu0  ;;  %v211_v62 = vadd.f32 %v3175_v13, %v3221_v60 }
 0x6aa   :  { %2735 = vtanh.f32 %v536_v2  ;;  %v2223_v6 = vmul.f32 -1.442695, %v536_v2 }
 0x6ac   :  { %2737 = vpow2.f32 %v2223_v6 }
 0x6b4   :  { %v2736_v4 = vpop.eup %2735 }
 0x6b5   :  { %546 = vrot.lane.b32.xlu1 %v2736_v4, %s3000_s24 }
 0x6b6   :  { %v2738_v7 = vpop.eup %2737 }
 0x6b7   :  { %v540_v8 = vadd.f32 1.0, %v2738_v7 }
 0x6b9   :  { %2739 = vrcp.f32 %v540_v8 }
 0x6c3   :  { %v2740_v9 = vpop.eup %2739 }
 0x6c4   :  { %v544_v15 = vmul.f32 %v2740_v9, %v443_v51 }
 0x727   :  { %v547_v11 = vpop.permute.xlu1 %546 }
 0x728   :  { %v549_v12 = vmul.f32 %v2740_v9, %v547_v11 }
 0x72a   :  { %551 = vrot.lane.b32.xlu0 %v549_v12, %s3000_s24 }
 0x79c   :  { %v552_v16 = vpop.permute.xlu0 %551 }
 0x79d   :  { %v554_v14 = vadd.f32 %v552_v16, %v544_v15 }
 0x79f   :  { %2741 = vtanh.f32 %v554_v14 }
 0x7a9   :  { %v2742_v17 = vpop.eup %2741 }
 0x7aa   :  { %557 = vrot.lane.b32.xlu1 %v2742_v17, %s3000_s24 }
 0x81c   :  { %v558_v19 = vpop.permute.xlu1 %557 }
 0x81d   :  { %v3235_v20 = vmul.f32 %v2740_v9, %v558_v19  ;;  %v216_v19 = vadd.f32 %v3215_v57, %v3175_v13  ;;  %v2288_v57 = vpack.c.bf16 %v3186_v36, %v3186_v36 }
 0x81f   :  { %573 = vrot.lane.b32.xlu0 %v3235_v20, %s2994_s1 }
 0x891   :  { %v574_v21 = vpop.permute.xlu0 %573 }
 0x892   :  { %2450 = vmatmul.mubr.msk.f32.vlgmr.msra.gmra.mrb[4].mxu1 %vm144_vm1, %v574_v21 }
 0x893   :  { %2628 = vmatpush3.bf16.msra.mxu1 %v3138_v5  ;;  %2471 = vmatprep.mubr.msk.f32.mxu1 %vm2998_vm0, %v2999_v1 }
 0x894   :  { %2629 = vmatprep.subr.bf16.mxu1 %v2997_v0 }
 0x897   :  { %2631 = vmatpush3.bf16.msra.mxu1 %v3152_v10 }
 0x898   :  { %2638 = vmatprep.subr.bf16.mxu1 %v2997_v0 }
 0x965   :  { %v643_v23 = vpop.f32.mrb[4].mxu1 }
 0x966   :  { %v647_v24 = vadd.f32 %v643_v23, %v203_v22  ;;  %v2451_v25 = vpop.f32.mrb[5].mxu1 }
 0x968   :  { %2743 = vtanh.f32 %v647_v24  ;;  %v2227_v27 = vmul.f32 -1.442695, %v647_v24 }
 0x96a   :  { %2745 = vpow2.f32 %v2227_v27 }
 0x972   :  { %v2744_v26 = vpop.eup %2743 }
 0x973   :  { %657 = vrot.lane.b32.xlu1 %v2744_v26, %s3000_s24 }
 0x974   :  { %v2746_v28 = vpop.eup %2745 }
 0x975   :  { %v651_v29 = vadd.f32 1.0, %v2746_v28 }
 0x977   :  { %2747 = vrcp.f32 %v651_v29 }
 0x981   :  { %v2748_v30 = vpop.eup %2747 }
 0x982   :  { %v655_v33 = vmul.f32 %v2748_v30, %v554_v14 }
 0x9e5   :  { %v658_v31 = vpop.permute.xlu1 %657 }
 0x9e6   :  { %v660_v32 = vmul.f32 %v2748_v30, %v658_v31  ;;  %v2290_v31 = vpack.c.bf16 %v3235_v20, %v3235_v20  ;;  %v2714_v20 = vld [vmem:[#allocation9 + $0x8] sm:$0xff]  }
 0x9e8   :  { %662 = vrot.lane.b32.xlu0 %v660_v32, %s3000_s24 }
 0xa5a   :  { %v663_v34 = vpop.permute.xlu0 %662 }
 0xa5b   :  { %v665_v18 = vadd.f32 %v663_v34, %v655_v33 }
 0xa5d   :  { %2749 = vtanh.f32 %v665_v18 }
 0xa67   :  { %v2750_v35 = vpop.eup %2749 }
 0xa68   :  { %668 = vrot.lane.b32.xlu1 %v2750_v35, %s3000_s24  ;;  %v2713_v35 = vld [vmem:[#allocation9] sm:$0xff]  }
 0xada   :  { %v669_v37 = vpop.permute.xlu1 %668 }
 0xadb   :  { %v3251_v38 = vmul.f32 %v2748_v30, %v669_v37 }
 0xadd   :  { %684 = vrot.lane.b32.xlu0 %v3251_v38, %s2994_s1 }
 0xb4f   :  { %v685_v39 = vpop.permute.xlu0 %684 }
 0xb50   :  { %2461 = vmatmul.mubr.msk.f32.vlgmr.msra.gmra.mrb[10].mxu0 %vm144_vm1, %v685_v39  ;;  %v2289_v39 = vpack.c.bf16 %v3211_v56, %v3211_v56 }
 0xb51   :  { %2634 = vmatpush3.bf16.msra.mxu0 %v3138_v5  ;;  %2482 = vmatprep.mubr.msk.f32.mxu0 %vm2998_vm0, %v2999_v1 }
 0xb52   :  { %2635 = vmatprep.subr.bf16.mxu0 %v2997_v0 }
 0xb55   :  { %2637 = vmatpush3.bf16.msra.mxu0 %v3152_v10 }
 0xb56   :  { %2496 = vmatprep.subr.bf16.mxu0 %v2713_v35 }
 0xc23   :  { %v754_v41 = vpop.f32.mrb[10].mxu0 }
 0xc24   :  { %v758_v42 = vadd.f32 %v754_v41, %v208_v40  ;;  %v2462_v43 = vpop.f32.mrb[11].mxu0  ;;  %v2291_v40 = vpack.c.bf16 %v3251_v38, %v3251_v38 }
 0xc26   :  { %2751 = vtanh.f32 %v758_v42  ;;  %v2231_v45 = vmul.f32 -1.442695, %v758_v42 }
 0xc28   :  { %2753 = vpow2.f32 %v2231_v45  ;;  %v1272_v45 = vld [vmem:[%s3635_s7 + $0x8] sm:$0xff] }
 0xc30   :  { %v2752_v44 = vpop.eup %2751 }
 0xc31   :  { %768 = vrot.lane.b32.xlu1 %v2752_v44, %s3000_s24  ;;  %v1271_v44 = vld [vmem:[%s3635_s7] sm:$0xff] }
 0xc32   :  { %v2754_v46 = vpop.eup %2753 }
 0xc33   :  { %v762_v47 = vadd.f32 1.0, %v2754_v46 }
 0xc35   :  { %2755 = vrcp.f32 %v762_v47  ;;  %v3341_v47 = vpack.c.bf16 %v1272_v45, %v1271_v44 }
 0xc3f   :  { %v2756_v48 = vpop.eup %2755 }
 0xc40   :  { %v766_v51 = vmul.f32 %v2756_v48, %v665_v18 }
 0xca3   :  { %v769_v49 = vpop.permute.xlu1 %768 }
 0xca4   :  { %v771_v50 = vmul.f32 %v2756_v48, %v769_v49  ;;  %v1274_v49 = vld [vmem:[%s3635_s7 + $0x18] sm:$0xff] }
 0xca6   :  { %773 = vrot.lane.b32.xlu0 %v771_v50, %s3000_s24 }
 0xd18   :  { %v774_v52 = vpop.permute.xlu0 %773 }
 0xd19   :  { %v776_v53 = vadd.f32 %v774_v52, %v766_v51  ;;  %v1278_v51 = vld [vmem:[#allocation6 + $0x8] sm:$0xff] }
 0xd1b   :  { %2757 = vtanh.f32 %v776_v53 }
 0xd25   :  { %v2758_v54 = vpop.eup %2757 }
 0xd26   :  { %779 = vrot.lane.b32.xlu1 %v2758_v54, %s3000_s24 }
 0xd98   :  { %v780_v55 = vpop.permute.xlu1 %779 }
 0xd99   :  { %v3266_v58 = vmul.f32 %v2756_v48, %v780_v55  ;;  %v1273_v48 = vld [vmem:[%s3635_s7 + $0x10] sm:$0xff] }
 0xd9a   :  { %v3352_v50 = vpack.c.bf16 %v1274_v49, %v1273_v48 }
 0xd9b   :  { %795 = vrot.lane.b32.xlu0 %v3266_v58, %s2994_s1 }
 0xe0d   :  { %v796_v61 = vpop.permute.xlu0 %795 }
 0xe0e   :  { %2472 = vmatmul.mubr.msk.f32.vlgmr.msra.gmra.mrb[6].mxu1 %vm144_vm1, %v796_v61 }
 0xe0f   :  { %2640 = vmatpush3.bf16.msra.mxu1 %v3138_v5  ;;  %2493 = vmatprep.mubr.msk.f32.mxu1 %vm2998_vm0, %v2999_v1 }
 0xe10   :  { %2641 = vmatprep.subr.bf16.mxu1 %v2997_v0 }
 0xe13   :  { %2643 = vmatpush3.bf16.msra.mxu1 %v3152_v10 }
 0xe14   :  { %2644 = vmatprep.subr.bf16.mxu1 %v2997_v0 }
 0xee1   :  { %v865_v63 = vpop.f32.mrb[6].mxu1 }
 0xee2   :  { %v869_v2 = vadd.f32 %v865_v63, %v211_v62  ;;  %v2473_v3 = vpop.f32.mrb[7].mxu1  ;;  %v219_v63 = vadd.f32 %v3219_v59, %v3175_v13 }
 0xee4   :  { %2759 = vtanh.f32 %v869_v2  ;;  %v2235_v5 = vmul.f32 -1.442695, %v869_v2 }
 0xee6   :  { %2761 = vpow2.f32 %v2235_v5  ;;  %v3382_v5 = vld [vmem:[%s3636_s8] ss:$0 sm:$0xff] }
 0xeee   :  { %v2760_v4 = vpop.eup %2759 }
 0xeef   :  { %879 = vrot.lane.b32.xlu1 %v2760_v4, %s3000_s24 }
 0xef0   :  { %v2762_v6 = vpop.eup %2761 }
 0xef1   :  { %v873_v7 = vadd.f32 1.0, %v2762_v6 }
 0xef3   :  { %2763 = vrcp.f32 %v873_v7 }
 0xefd   :  { %v2764_v8 = vpop.eup %2763 }
 0xefe   :  { %v877_v11 = vmul.f32 %v2764_v8, %v776_v53  ;;  %v1276_v53 = vld [vmem:[#allocation3 + $0x8] sm:$0xff] }
 0xf61   :  { %v880_v9 = vpop.permute.xlu1 %879 }
 0xf62   :  { %v882_v10 = vmul.f32 %v2764_v8, %v880_v9 }
 0xf64   :  { %884 = vrot.lane.b32.xlu0 %v882_v10, %s3000_s24 }
 0xfd6   :  { %v885_v12 = vpop.permute.xlu0 %884 }
 0xfd7   :  { %v887_v60 = vadd.f32 %v885_v12, %v877_v11 }
 0xfd9   :  { %2765 = vtanh.f32 %v887_v60 }
 0xfe3   :  { %v2766_v15 = vpop.eup %2765 }
 0xfe4   :  { %890 = vrot.lane.b32.xlu1 %v2766_v15, %s3000_s24 }
0x1056   :  { %v891_v16 = vpop.permute.xlu1 %890 }
0x1057   :  { %v3282_v14 = vmul.f32 %v2764_v8, %v891_v16 }
0x1059   :  { %906 = vrot.lane.b32.xlu0 %v3282_v14, %s2994_s1 }
0x10cb   :  { %v907_v17 = vpop.permute.xlu0 %906 }
0x10cc   :  { %2483 = vmatmul.mubr.msk.f32.vlgmr.msra.gmra.mrb[12].mxu0 %vm144_vm1, %v907_v17 }
0x10cd   :  { %2497 = vmatpush3.bf16.msra.mxu0 %v2713_v35  ;;  %v2292_v35 = vpack.c.bf16 %v3266_v58, %v3266_v58 }
0x10ce   :  { %2498 = vmatprep.subr.bf16.mxu0 %v2714_v20 }
0x10d1   :  { %2499 = vmatpush3.bf16.msra.mxu0 %v2714_v20 }
0x10d2   :  { %2656 = vmatprep.subr.bf16.mxu0 %v2997_v0 }
0x119f   :  { %v976_v21 = vpop.f32.mrb[12].mxu0 }
0x11a0   :  { %v980_v22 = vadd.f32 %v976_v21, %v216_v19  ;;  %v2484_v23 = vpop.f32.mrb[13].mxu0 }
0x11a2   :  { %2767 = vtanh.f32 %v980_v22  ;;  %v2239_v25 = vmul.f32 -1.442695, %v980_v22 }
0x11a4   :  { %2769 = vpow2.f32 %v2239_v25 }
0x11ac   :  { %v2768_v24 = vpop.eup %2767 }
0x11ad   :  { %990 = vrot.lane.b32.xlu1 %v2768_v24, %s3000_s24 }
0x11ae   :  { %v2770_v26 = vpop.eup %2769 }
0x11af   :  { %v984_v27 = vadd.f32 1.0, %v2770_v26 }
0x11b1   :  { %2771 = vrcp.f32 %v984_v27 }
0x11bb   :  { %v2772_v28 = vpop.eup %2771 }
0x11bc   :  { %v988_v32 = vmul.f32 %v2772_v28, %v887_v60 }
0x121f   :  { %v991_v29 = vpop.permute.xlu1 %990 }
0x1220   :  { %v993_v30 = vmul.f32 %v2772_v28, %v991_v29 }
0x1222   :  { %995 = vrot.lane.b32.xlu0 %v993_v30, %s3000_s24 }
0x1226   :  { %343 = vrot.lane.b32.xlu0 %v2288_v57, %s2994_s1 }
0x122a   :  { %565 = vrot.lane.b32.xlu0 %v2290_v31, %s2994_s1 }
0x1294   :  { %v996_v33 = vpop.permute.xlu0 %995 }
0x1295   :  { %v3297_v34 = vadd.f32 %v996_v33, %v988_v32 }
0x1297   :  { %2773 = vtanh.f32 %v3297_v34 }
0x1298   :  { %v344_v18 = vpop.permute.xlu0 %343 }
0x1299   :  { %347 = vst.msk [vmem:[%s3637_s9] sm:$0xf] %vm346_vm2, %v344_v18 }
0x129c   :  { %v566_v36 = vpop.permute.xlu0 %565 }
0x129d   :  { %2225 = vst.msk [vmem:[%s3637_s9 + $0x8] sm:$0xf] %vm346_vm2, %v566_v36 }
0x12a1   :  { %v2774_v37 = vpop.eup %2773 }
0x12a2   :  { %1001 = vrot.lane.b32.xlu1 %v2774_v37, %s3000_s24 }
0x12a6   :  { %454 = vrot.lane.b32.xlu1 %v2289_v39, %s2994_s1 }
0x12aa   :  { %676 = vrot.lane.b32.xlu1 %v2291_v40, %s2994_s1 }
0x1314   :  { %v1002_v41 = vpop.permute.xlu1 %1001 }
0x1315   :  { %v3316_v42 = vmul.f32 %v2772_v28, %v1002_v41 }
0x1317   :  { %1017 = vrot.lane.b32.xlu0 %v3316_v42, %s2994_s1 }
0x1318   :  { %v455_v43 = vpop.permute.xlu1 %454 }
0x1319   :  { %2221 = vst.msk [vmem:[%s3637_s9 + $0x4] sm:$0xf] %vm346_vm2, %v455_v43 }
0x131b   :  { %1362 = vrot.lane.b32.xlu0 %v1278_v51, %s3000_s24 }
0x131c   :  { %v677_v56 = vpop.permute.xlu1 %676 }
0x131d   :  { %2229 = vst.msk [vmem:[%s3637_s9 + $0xc] sm:$0xf] %vm346_vm2, %v677_v56 }
0x1320   :  { %v2715_v38 = vld [vmem:[%s3637_s9] sm:$0xff]  }
0x1321   :  { %2500 = vmatprep.mubr.msk.bf16.mxu0 %vm144_vm1, %v2715_v38 }
0x1324   :  { %v2716_v46 = vld [vmem:[%s3637_s9 + $0x8] sm:$0xff]  }
0x1325   :  { %2501 = vmatmul.mubr.msk.bf16.vlgmr.msra.gmra.mrb[16].mxu0 %vm144_vm1, %v2716_v46 }
0x1326   :  { %2658 = vmatpush3.bf16.msra.mxu0 %v3341_v47 }
0x1327   :  { %2659 = vmatprep.subr.bf16.mxu0 %v2997_v0 }
0x132a   :  { %2661 = vmatpush3.bf16.msra.mxu0 %v3352_v50 }
0x132b   :  { %2668 = vmatprep.subr.bf16.mxu0 %v2997_v0 }
0x1389   :  { %v1018_v52 = vpop.permute.xlu0 %1017 }
0x138a   :  { %2494 = vmatmul.mubr.msk.f32.vlgmr.msra.gmra.mrb[8].mxu1 %vm144_vm1, %v1018_v52 }
0x138b   :  { %2646 = vmatpush3.bf16.msra.mxu1 %v3341_v47  ;;  %2516 = vmatprep.mubr.msk.f32.mxu1 %vm2998_vm0, %v2999_v1 }
0x138c   :  { %2647 = vmatprep.subr.bf16.mxu1 %v2997_v0 }
0x138d   :  { %v1363_v16 = vpop.permute.xlu0 %1362 }
0x138f   :  { %2649 = vmatpush3.bf16.msra.mxu1 %v3352_v50 }
0x1390   :  { %2650 = vmatprep.subr.bf16.mxu1 %v2997_v0 }
0x1392   :  { %2517 = vmatmul.mubr.msk.f32.vlgmr.msra.gmra.mrb[10].mxu1 %vm144_vm1, %v1276_v53 }
0x1393   :  { %2652 = vmatpush3.bf16.msra.mxu1 %v3341_v47  ;;  %2527 = vmatprep.mubr.msk.f32.mxu1 %vm2998_vm0, %v2999_v1 }
0x1394   :  { %2653 = vmatprep.subr.bf16.mxu1 %v2997_v0 }
0x1397   :  { %2655 = vmatpush3.bf16.msra.mxu1 %v3352_v50 }
0x1398   :  { %2662 = vmatprep.subr.bf16.mxu1 %v2997_v0 }
0x13f8   :  { %v3371_v54 = vpop.f32.mrb[16].mxu0 }
0x13f9   :  { %v1232_v55 = vpop.f32.mrb[17].mxu0 }
0x13fa   :  { %v3373_v61 = vpop.f32.mrb[18].mxu0  ;;  %v1233_v6 = vadd.f32 %v3382_v5, %v1232_v55 }
0x13fb   :  { %v3375_v62 = vpop.f32.mrb[19].mxu0 }
0x13fc   :  { %v1236_v58 = vadd.f32 %v3382_v5, %v3375_v62  ;;  %v2293_v62 = vpack.c.bf16 %v3282_v14, %v3282_v14 }
0x145d   :  { %v1087_v2 = vpop.f32.mrb[8].mxu1 }
0x145e   :  { %v1091_v3 = vadd.f32 %v1087_v2, %v219_v63  ;;  %v2495_v4 = vpop.f32.mrb[9].mxu1 }
0x1460   :  { %v2243_v24 = vmul.f32 -1.442695, %v1091_v3 }
0x1465   :  { %v1349_v7 = vpop.f32.mrb[10].mxu1 }
0x1466   :  { %v1353_v8 = vadd.f32 %v1349_v7, %v1233_v6  ;;  %v2518_v9 = vpop.f32.mrb[11].mxu1 }
0x1468   :  { %2775 = vtanh.f32 %v1353_v8  ;;  %v2258_v11 = vmul.f32 -1.442695, %v1353_v8 }
0x146a   :  { %2777 = vpow2.f32 %v2258_v11 }
0x1472   :  { %v2776_v10 = vpop.eup %2775 }
0x1473   :  { %1367 = vrot.lane.b32.xlu1 %v2776_v10, %s3000_s24 }
0x1474   :  { %v2778_v13 = vpop.eup %2777 }
0x1475   :  { %v1357_v59 = vadd.f32 1.0, %v2778_v13 }
0x1477   :  { %2779 = vrcp.f32 %v1357_v59  ;;  %v1241_v59 = vadd.f32 %v3371_v54, %v3382_v5 }
0x1481   :  { %v2780_v12 = vpop.eup %2779 }
0x1482   :  { %v1365_v17 = vmul.f32 %v2780_v12, %v1363_v16 }
0x14e5   :  { %v1368_v60 = vpop.permute.xlu1 %1367 }
0x14e6   :  { %v1370_v15 = vmul.f32 %v2780_v12, %v1368_v60 }
0x14e8   :  { %1372 = vrot.lane.b32.xlu1 %v1370_v15, %s3000_s24 }
0x155a   :  { %v1373_v19 = vpop.permute.xlu1 %1372 }
0x155b   :  { %v1375_v21 = vadd.f32 %v1373_v19, %v1365_v17 }
0x155d   :  { %2781 = vtanh.f32 %v1375_v21 }
0x155e   :  { %2783 = vtanh.f32 %v1091_v3 }
0x155f   :  { %2785 = vpow2.f32 %v2243_v24 }
0x1567   :  { %v2782_v22 = vpop.eup %2781 }
0x1568   :  { %1378 = vrot.lane.b32.xlu0 %v2782_v22, %s3000_s24  ;;  %v2784_v23 = vpop.eup %2783 }
0x1569   :  { %v2786_v25 = vpop.eup %2785 }
0x156a   :  { %v1095_v26 = vadd.f32 1.0, %v2786_v25 }
0x156c   :  { %1101 = vrot.lane.b32.xlu0 %v2784_v23, %s3000_s24  ;;  %2787 = vrcp.f32 %v1095_v26 }
0x1576   :  { %v2788_v29 = vpop.eup %2787 }
0x1577   :  { %v1099_v32 = vmul.f32 %v2788_v29, %v3297_v34  ;;  %v2294_v34 = vpack.c.bf16 %v3316_v42, %v3316_v42 }
0x15da   :  { %v1379_v27 = vpop.permute.xlu0 %1378 }
0x15db   :  { %v3389_v28 = vmul.f32 %v2780_v12, %v1379_v27 }
0x15dd   :  { %1392 = vrot.lane.b32.xlu1 %v3389_v28, %s2994_s1 }
0x15de   :  { %v1102_v30 = vpop.permute.xlu0 %1101 }
0x15df   :  { %v1104_v57 = vmul.f32 %v2788_v29, %v1102_v30 }
0x15e1   :  { %1106 = vrot.lane.b32.xlu0 %v1104_v57, %s3000_s24 }
0x164f   :  { %v1393_v31 = vpop.permute.xlu1 %1392 }
0x1650   :  { %2528 = vmatmul.mubr.msk.f32.vlgmr.msra.gmra.mrb[12].mxu1 %vm144_vm1, %v1393_v31  ;;  %v1244_v31 = vadd.f32 %v3373_v61, %v3382_v5 }
0x1651   :  { %2664 = vmatpush3.bf16.msra.mxu1 %v3341_v47  ;;  %2549 = vmatprep.mubr.msk.f32.mxu1 %vm2998_vm0, %v2999_v1 }
0x1652   :  { %2665 = vmatprep.subr.bf16.mxu1 %v2997_v0 }
0x1653   :  { %v1107_v33 = vpop.permute.xlu0 %1106 }
0x1654   :  { %v3400_v18 = vadd.f32 %v1107_v33, %v1099_v32 }
0x1655   :  { %2667 = vmatpush3.bf16.msra.mxu1 %v3352_v50 }
0x1656   :  { %2789 = vtanh.f32 %v3400_v18  ;;  %2674 = vmatprep.subr.bf16.mxu1 %v2997_v0 }
0x1660   :  { %v2790_v36 = vpop.eup %2789 }
0x1661   :  { %1112 = vrot.lane.b32.xlu0 %v2790_v36, %s3000_s24 }
0x1665   :  { %787 = vrot.lane.b32.xlu0 %v2292_v35, %s2994_s1 }
0x1669   :  { %1009 = vrot.lane.b32.xlu0 %v2294_v34, %s2994_s1 }
0x16d3   :  { %v1113_v20 = vpop.permute.xlu0 %1112 }
0x16d4   :  { %v3425_v55 = vmul.f32 %v2788_v29, %v1113_v20 }
0x16d6   :  { %v2295_v63 = vpack.c.bf16 %v3425_v55, %v3425_v55 }
0x16d7   :  { %v788_v37 = vpop.permute.xlu0 %787 }
0x16d8   :  { %2233 = vst.msk [vmem:[%s3637_s9 + $0x10] sm:$0xf] %vm346_vm2, %v788_v37 }
0x16db   :  { %v1010_v39 = vpop.permute.xlu0 %1009 }
0x16dc   :  { %2241 = vst.msk [vmem:[%s3637_s9 + $0x18] sm:$0xf] %vm346_vm2, %v1010_v39 }
0x1723   :  { %v1462_v40 = vpop.f32.mrb[12].mxu1 }
0x1724   :  { %v1466_v41 = vadd.f32 %v1462_v40, %v1236_v58  ;;  %v2529_v42 = vpop.f32.mrb[13].mxu1 }
0x1726   :  { %2791 = vtanh.f32 %v1466_v41  ;;  %v2261_v56 = vmul.f32 -1.442695, %v1466_v41 }
0x1728   :  { %2793 = vpow2.f32 %v2261_v56 }
0x1730   :  { %v2792_v43 = vpop.eup %2791 }
0x1731   :  { %1476 = vrot.lane.b32.xlu1 %v2792_v43, %s3000_s24 }
0x1732   :  { %v2794_v38 = vpop.eup %2793 }
0x1733   :  { %v1470_v44 = vadd.f32 1.0, %v2794_v38 }
0x1735   :  { %2795 = vrcp.f32 %v1470_v44 }
0x173f   :  { %v2796_v45 = vpop.eup %2795 }
0x1740   :  { %v1474_v49 = vmul.f32 %v2796_v45, %v1375_v21 }
0x17a3   :  { %v1477_v46 = vpop.permute.xlu1 %1476 }
0x17a4   :  { %v1479_v48 = vmul.f32 %v2796_v45, %v1477_v46 }
0x17a6   :  { %1481 = vrot.lane.b32.xlu1 %v1479_v48, %s3000_s24 }
0x1818   :  { %v1482_v51 = vpop.permute.xlu1 %1481 }
0x1819   :  { %v1484_v52 = vadd.f32 %v1482_v51, %v1474_v49 }
0x181b   :  { %2797 = vtanh.f32 %v1484_v52 }
0x1825   :  { %v2798_v53 = vpop.eup %2797 }
0x1826   :  { %1487 = vrot.lane.b32.xlu1 %v2798_v53, %s3000_s24 }
0x182a   :  { %898 = vrot.lane.b32.xlu1 %v2293_v62, %s2994_s1 }
0x182e   :  { %1120 = vrot.lane.b32.xlu1 %v2295_v63, %s2994_s1 }
0x1898   :  { %v1488_v2 = vpop.permute.xlu1 %1487 }
0x1899   :  { %v3433_v3 = vmul.f32 %v2796_v45, %v1488_v2 }
0x189b   :  { %1501 = vrot.lane.b32.xlu0 %v3433_v3, %s2994_s1 }
0x189c   :  { %v899_v4 = vpop.permute.xlu1 %898 }
0x189d   :  { %2237 = vst.msk [vmem:[%s3637_s9 + $0x14] sm:$0xf] %vm346_vm2, %v899_v4 }
0x18a0   :  { %v1121_v14 = vpop.permute.xlu1 %1120 }
0x18a1   :  { %2245 = vst.msk [vmem:[%s3637_s9 + $0x1c] sm:$0xf] %vm346_vm2, %v1121_v14 }
0x18a4   :  { %v2717_v6 = vld [vmem:[%s3637_s9 + $0x10] sm:$0xff]  }
0x18a5   :  { %2504 = vmatprep.mubr.msk.bf16.mxu0 %vm144_vm1, %v2717_v6 }
0x18a8   :  { %v2718_v7 = vld [vmem:[%s3637_s9 + $0x18] sm:$0xff]  }
0x18a9   :  { %2505 = vmatmul.mubr.msk.bf16.gmra.mrb[20].mxu0 %vm144_vm1, %v2718_v7 }
0x18aa   :  { %2538 = vmatprep.mubr.msk.f32.mxu0 %vm2998_vm0, %v2999_v1 }
0x190d   :  { %v1502_v8 = vpop.permute.xlu0 %1501 }
0x190e   :  { %2539 = vmatmul.mubr.msk.f32.vlgmr.msra.gmra.mrb[14].mxu0 %vm144_vm1, %v1502_v8 }
0x190f   :  { %2670 = vmatpush3.bf16.msra.mxu0 %v3341_v47  ;;  %2560 = vmatprep.mubr.msk.f32.mxu0 %vm2998_vm0, %v2999_v1 }
0x1910   :  { %2671 = vmatprep.subr.bf16.mxu0 %v2997_v0 }
0x1913   :  { %2673 = vmatpush3.bf16.msra.mxu0 %v3352_v50 }
0x1914   :  { %2680 = vmatprep.subr.bf16.mxu0 %v2997_v0 }
0x197c   :  { %v3462_v9 = vpop.f32.mrb[20].mxu0 }
0x197d   :  { %v3464_v10 = vpop.f32.mrb[21].mxu0 }
0x197e   :  { %v3466_v11 = vpop.f32.mrb[22].mxu0  ;;  %v1249_v45 = vadd.f32 %v3382_v5, %v3464_v10 }
0x197f   :  { %v3468_v13 = vpop.f32.mrb[23].mxu0 }
0x19e1   :  { %v1571_v12 = vpop.f32.mrb[14].mxu0 }
0x19e2   :  { %v1575_v60 = vadd.f32 %v1571_v12, %v1241_v59  ;;  %v2540_v15 = vpop.f32.mrb[15].mxu0 }
0x19e4   :  { %2799 = vtanh.f32 %v1575_v60  ;;  %v2265_v17 = vmul.f32 -1.442695, %v1575_v60  ;;  %v1252_v60 = vadd.f32 %v3382_v5, %v3468_v13 }
0x19e6   :  { %2801 = vpow2.f32 %v2265_v17 }
0x19ee   :  { %v2800_v16 = vpop.eup %2799 }
0x19ef   :  { %1585 = vrot.lane.b32.xlu1 %v2800_v16, %s3000_s24 }
0x19f0   :  { %v2802_v19 = vpop.eup %2801 }
0x19f1   :  { %v1579_v21 = vadd.f32 1.0, %v2802_v19 }
0x19f3   :  { %2803 = vrcp.f32 %v1579_v21 }
0x19fd   :  { %v2804_v22 = vpop.eup %2803 }
0x19fe   :  { %v1583_v25 = vmul.f32 %v2804_v22, %v1484_v52 }
0x1a61   :  { %v1586_v23 = vpop.permute.xlu1 %1585 }
0x1a62   :  { %v1588_v24 = vmul.f32 %v2804_v22, %v1586_v23 }
0x1a64   :  { %1590 = vrot.lane.b32.xlu0 %v1588_v24, %s3000_s24 }
0x1ad6   :  { %v1591_v26 = vpop.permute.xlu0 %1590 }
0x1ad7   :  { %v1593_v54 = vadd.f32 %v1591_v26, %v1583_v25 }
0x1ad9   :  { %2805 = vtanh.f32 %v1593_v54 }
0x1ae3   :  { %v2806_v27 = vpop.eup %2805 }
0x1ae4   :  { %1596 = vrot.lane.b32.xlu1 %v2806_v27, %s3000_s24 }
0x1b56   :  { %v1597_v29 = vpop.permute.xlu1 %1596 }
0x1b57   :  { %v3475_v30 = vmul.f32 %v2804_v22, %v1597_v29  ;;  %v1257_v29 = vadd.f32 %v3462_v9, %v3382_v5 }
0x1b59   :  { %1610 = vrot.lane.b32.xlu0 %v3475_v30, %s2994_s1 }
0x1bcb   :  { %v1611_v57 = vpop.permute.xlu0 %1610 }
0x1bcc   :  { %2550 = vmatmul.mubr.msk.f32.vlgmr.msra.gmra.mrb[14].mxu1 %vm144_vm1, %v1611_v57 }
0x1bcd   :  { %2676 = vmatpush3.bf16.msra.mxu1 %v3341_v47  ;;  %2571 = vmatprep.mubr.msk.f32.mxu1 %vm2998_vm0, %v2999_v1 }
0x1bce   :  { %2677 = vmatprep.subr.bf16.mxu1 %v2997_v0 }
0x1bd1   :  { %2679 = vmatpush3.bf16.msra.mxu1 %v3352_v50 }
0x1bd2   :  { %2686 = vmatprep.subr.bf16.mxu1 %v2997_v0 }
0x1c9f   :  { %v1680_v32 = vpop.f32.mrb[14].mxu1 }
0x1ca0   :  { %v1684_v33 = vadd.f32 %v1680_v32, %v1244_v31  ;;  %v2551_v36 = vpop.f32.mrb[15].mxu1 }
0x1ca2   :  { %2807 = vtanh.f32 %v1684_v33  ;;  %v2269_v34 = vmul.f32 -1.442695, %v1684_v33 }
0x1ca4   :  { %2809 = vpow2.f32 %v2269_v34 }
0x1cac   :  { %v2808_v35 = vpop.eup %2807 }
0x1cad   :  { %1694 = vrot.lane.b32.xlu1 %v2808_v35, %s3000_s24 }
0x1cae   :  { %v2810_v20 = vpop.eup %2809 }
0x1caf   :  { %v1688_v37 = vadd.f32 1.0, %v2810_v20 }
0x1cb1   :  { %2811 = vrcp.f32 %v1688_v37 }
0x1cbb   :  { %v2812_v39 = vpop.eup %2811 }
0x1cbc   :  { %v1692_v41 = vmul.f32 %v2812_v39, %v1593_v54 }
0x1d1f   :  { %v1695_v58 = vpop.permute.xlu1 %1694 }
0x1d20   :  { %v1697_v40 = vmul.f32 %v2812_v39, %v1695_v58 }
0x1d22   :  { %1699 = vrot.lane.b32.xlu0 %v1697_v40, %s3000_s24 }
0x1d94   :  { %v1700_v42 = vpop.permute.xlu0 %1699 }
0x1d95   :  { %v1702_v61 = vadd.f32 %v1700_v42, %v1692_v41 }
0x1d97   :  { %2813 = vtanh.f32 %v1702_v61 }
0x1da1   :  { %v2814_v43 = vpop.eup %2813 }
0x1da2   :  { %1705 = vrot.lane.b32.xlu1 %v2814_v43, %s3000_s24 }
0x1e14   :  { %v1706_v56 = vpop.permute.xlu1 %1705 }
0x1e15   :  { %v3491_v38 = vmul.f32 %v2812_v39, %v1706_v56  ;;  %v1260_v56 = vadd.f32 %v3466_v11, %v3382_v5  ;;  %v2296_v5 = vpack.c.bf16 %v3389_v28, %v3389_v28  ;;  %v2298_v11 = vpack.c.bf16 %v3475_v30, %v3475_v30 }
0x1e17   :  { %1719 = vrot.lane.b32.xlu0 %v3491_v38, %s2994_s1 }
0x1e89   :  { %v1720_v44 = vpop.permute.xlu0 %1719 }
0x1e8a   :  { %2561 = vmatmul.mubr.msk.f32.vlgmr.msra.gmra.mrb[24].mxu0 %vm144_vm1, %v1720_v44 }
0x1e8b   :  { %2682 = vmatpush3.bf16.msra.mxu0 %v3341_v47  ;;  %2582 = vmatprep.mubr.msk.f32.mxu0 %vm2998_vm0, %v2999_v1 }
0x1e8c   :  { %2683 = vmatprep.subr.bf16.mxu0 %v2997_v0 }
0x1e8f   :  { %2685 = vmatpush3.bf16.msra.mxu0 %v3352_v50 }
0x1f5d   :  { %v1789_v46 = vpop.f32.mrb[24].mxu0 }
0x1f5e   :  { %v1793_v48 = vadd.f32 %v1789_v46, %v1249_v45  ;;  %v2562_v49 = vpop.f32.mrb[25].mxu0 }
0x1f60   :  { %2815 = vtanh.f32 %v1793_v48  ;;  %v2273_v52 = vmul.f32 -1.442695, %v1793_v48 }
0x1f62   :  { %2817 = vpow2.f32 %v2273_v52 }
0x1f6a   :  { %v2816_v51 = vpop.eup %2815 }
0x1f6b   :  { %1803 = vrot.lane.b32.xlu1 %v2816_v51, %s3000_s24 }
0x1f6c   :  { %v2818_v53 = vpop.eup %2817 }
0x1f6d   :  { %v1797_v62 = vadd.f32 1.0, %v2818_v53 }
0x1f6f   :  { %2819 = vrcp.f32 %v1797_v62 }
0x1f79   :  { %v2820_v63 = vpop.eup %2819 }
0x1f7a   :  { %v1801_v14 = vmul.f32 %v2820_v63, %v1702_v61 }
0x1fdd   :  { %v1804_v2 = vpop.permute.xlu1 %1803 }
0x1fde   :  { %v1806_v4 = vmul.f32 %v2820_v63, %v1804_v2 }
0x1fe0   :  { %1808 = vrot.lane.b32.xlu0 %v1806_v4, %s3000_s24 }
0x2052   :  { %v1809_v6 = vpop.permute.xlu0 %1808 }
0x2053   :  { %v1811_v7 = vadd.f32 %v1809_v6, %v1801_v14 }
0x2055   :  { %2821 = vtanh.f32 %v1811_v7 }
0x205f   :  { %v2822_v8 = vpop.eup %2821 }
0x2060   :  { %1814 = vrot.lane.b32.xlu1 %v2822_v8, %s3000_s24 }
0x20d2   :  { %v1815_v10 = vpop.permute.xlu1 %1814 }
0x20d3   :  { %v3506_v59 = vmul.f32 %v2820_v63, %v1815_v10  ;;  %v2297_v10 = vpack.c.bf16 %v3433_v3, %v3433_v3 }
0x20d5   :  { %1828 = vrot.lane.b32.xlu0 %v3506_v59, %s2994_s1  ;;  %v2300_v2 = vpack.c.bf16 %v3506_v59, %v3506_v59  ;;  %v2299_v59 = vpack.c.bf16 %v3491_v38, %v3491_v38 }
0x2147   :  { %v1829_v12 = vpop.permute.xlu0 %1828 }
0x2148   :  { %2572 = vmatmul.mubr.msk.f32.vlgmr.msra.gmra.mrb[16].mxu1 %vm144_vm1, %v1829_v12 }
0x2149   :  { %2688 = vmatpush3.bf16.msra.mxu1 %v3341_v47  ;;  %2593 = vmatprep.mubr.msk.f32.mxu1 %vm2998_vm0, %v2999_v1 }
0x214a   :  { %2689 = vmatprep.subr.bf16.mxu1 %v2997_v0 }
0x214d   :  { %2691 = vmatpush3.bf16.msra.mxu1 %v3352_v50 }
0x221b   :  { %v1898_v15 = vpop.f32.mrb[16].mxu1 }
0x221c   :  { %v1902_v16 = vadd.f32 %v1898_v15, %v1252_v60  ;;  %v2573_v17 = vpop.f32.mrb[17].mxu1 }
0x221e   :  { %2823 = vtanh.f32 %v1902_v16  ;;  %v2277_v21 = vmul.f32 -1.442695, %v1902_v16 }
0x2220   :  { %2825 = vpow2.f32 %v2277_v21 }
0x2228   :  { %v2824_v19 = vpop.eup %2823 }
0x2229   :  { %1912 = vrot.lane.b32.xlu1 %v2824_v19, %s3000_s24 }
0x222a   :  { %v2826_v47 = vpop.eup %2825 }
0x222b   :  { %v1906_v22 = vadd.f32 1.0, %v2826_v47 }
0x222d   :  { %2827 = vrcp.f32 %v1906_v22 }
0x2237   :  { %v2828_v1 = vpop.eup %2827 }
0x2238   :  { %v1910_v50 = vmul.f32 %v2828_v1, %v1811_v7 }
0x229b   :  { %v1913_v23 = vpop.permute.xlu1 %1912 }
0x229c   :  { %v1915_v0 = vmul.f32 %v2828_v1, %v1913_v23 }
0x229e   :  { %1917 = vrot.lane.b32.xlu0 %v1915_v0, %s3000_s24 }
0x2310   :  { %v1918_v24 = vpop.permute.xlu0 %1917 }
0x2311   :  { %v1920_v13 = vadd.f32 %v1918_v24, %v1910_v50 }
0x2313   :  { %2829 = vtanh.f32 %v1920_v13 }
0x231d   :  { %v2830_v25 = vpop.eup %2829 }
0x231e   :  { %1923 = vrot.lane.b32.xlu1 %v2830_v25, %s3000_s24 }
0x2390   :  { %v1924_v26 = vpop.permute.xlu1 %1923 }
0x2391   :  { %v3521_v54 = vmul.f32 %v2828_v1, %v1924_v26 }
0x2393   :  { %1937 = vrot.lane.b32.xlu0 %v3521_v54, %s2994_s1  ;;  %v2301_v12 = vpack.c.bf16 %v3521_v54, %v3521_v54 }
0x2405   :  { %v1938_v27 = vpop.permute.xlu0 %1937 }
0x2406   :  { %2583 = vmatmul.mubr.msk.f32.vlgmr.msra.gmra.mrb[26].mxu0 %vm144_vm1, %v1938_v27 }
0x24d9   :  { %v2007_v57 = vpop.f32.mrb[26].mxu0 }
0x24da   :  { %v2011_v31 = vadd.f32 %v2007_v57, %v1257_v29  ;;  %v2584_v32 = vpop.f32.mrb[27].mxu0 }
0x24dc   :  { %2831 = vtanh.f32 %v2011_v31  ;;  %v2281_v36 = vmul.f32 -1.442695, %v2011_v31 }
0x24de   :  { %2833 = vpow2.f32 %v2281_v36 }
0x24e6   :  { %v2832_v33 = vpop.eup %2831 }
0x24e7   :  { %2021 = vrot.lane.b32.xlu1 %v2832_v33, %s3000_s24 }
0x24e8   :  { %v2834_v35 = vpop.eup %2833 }
0x24e9   :  { %v2015_v34 = vadd.f32 1.0, %v2834_v35 }
0x24eb   :  { %2835 = vrcp.f32 %v2015_v34 }
0x24f5   :  { %v2836_v20 = vpop.eup %2835 }
0x24f6   :  { %v2019_v58 = vmul.f32 %v2836_v20, %v1920_v13 }
0x2559   :  { %v2022_v37 = vpop.permute.xlu1 %2021 }
0x255a   :  { %v2024_v39 = vmul.f32 %v2836_v20, %v2022_v37 }
0x255c   :  { %2026 = vrot.lane.b32.xlu0 %v2024_v39, %s3000_s24 }
0x25ce   :  { %v2027_v40 = vpop.permute.xlu0 %2026 }
0x25cf   :  { %v2029_v9 = vadd.f32 %v2027_v40, %v2019_v58 }
0x25d1   :  { %2837 = vtanh.f32 %v2029_v9 }
0x25db   :  { %v2838_v41 = vpop.eup %2837 }
0x25dc   :  { %2032 = vrot.lane.b32.xlu1 %v2838_v41, %s3000_s24 }
0x264e   :  { %v2033_v42 = vpop.permute.xlu1 %2032 }
0x264f   :  { %v2035_v61 = vmul.f32 %v2836_v20, %v2033_v42 }
0x2651   :  { %2046 = vrot.lane.b32.xlu0 %v2035_v61, %s2994_s1  ;;  %v2302_v3 = vpack.c.bf16 %v2035_v61, %v2035_v61 }
0x26c3   :  { %v2047_v43 = vpop.permute.xlu0 %2046 }
0x26c4   :  { %2594 = vmatmul.mubr.msk.f32.vlgmr.msra.gmra.mrb[18].mxu1 %vm144_vm1, %v2047_v43 }
0x2797   :  { %v2116_v44 = vpop.f32.mrb[18].mxu1 }
0x2798   :  { %v2120_v45 = vadd.f32 %v2116_v44, %v1260_v56  ;;  %v2595_v46 = vpop.f32.mrb[19].mxu1 }
0x279a   :  { %2839 = vtanh.f32 %v2120_v45  ;;  %v2285_v49 = vmul.f32 -1.442695, %v2120_v45 }
0x279c   :  { %2841 = vpow2.f32 %v2285_v49 }
0x27a4   :  { %v2840_v48 = vpop.eup %2839 }
0x27a5   :  { %2130 = vrot.lane.b32.xlu1 %v2840_v48, %s3000_s24 }
0x27a6   :  { %v2842_v51 = vpop.eup %2841 }
0x27a7   :  { %v2124_v52 = vadd.f32 1.0, %v2842_v51 }
0x27a9   :  { %2843 = vrcp.f32 %v2124_v52 }
0x27b3   :  { %v2844_v53 = vpop.eup %2843 }
0x27b4   :  { %v2128_v4 = vmul.f32 %v2844_v53, %v2029_v9 }
0x2817   :  { %v2131_v62 = vpop.permute.xlu1 %2130 }
0x2818   :  { %v2133_v63 = vmul.f32 %v2844_v53, %v2131_v62 }
0x281a   :  { %2135 = vrot.lane.b32.xlu0 %v2133_v63, %s3000_s24 }
0x281e   :  { %1126 = vrot.lane.b32.xlu0 %v3425_v55, %s2994_s1 }
0x2822   :  { %1386 = vrot.lane.b32.xlu0 %v2296_v5, %s2994_s1 }
0x2826   :  { %1604 = vrot.lane.b32.xlu0 %v2298_v11, %s2994_s1 }
0x282a   :  { %1822 = vrot.lane.b32.xlu0 %v2300_v2, %s2994_s1 }
0x288c   :  { %v2136_v14 = vpop.permute.xlu0 %2135 }
0x288d   :  { %v2138_v6 = vadd.f32 %v2136_v14, %v2128_v4 }
0x288f   :  { %2845 = vtanh.f32 %v2138_v6 }
0x2890   :  { %v1127_v55 = vpop.permute.xlu0 %1126 }
0x2891   :  { %1129 = vst.msk [vmem:[#allocation11] sm:$0xff] %vm144_vm1, %v1127_v55 }
0x2894   :  { %v1387_v28 = vpop.permute.xlu0 %1386 }
0x2895   :  { %1389 = vst.msk [vmem:[%s3637_s9] sm:$0xf] %vm346_vm2, %v1387_v28 }
0x2898   :  { %v1605_v30 = vpop.permute.xlu0 %1604 }
0x2899   :  { %v2846_v7 = vpop.eup %2845  ;;  %2267 = vst.msk [vmem:[%s3637_s9 + $0x8] sm:$0xf] %vm346_vm2, %v1605_v30 }
0x289a   :  { %2141 = vrot.lane.b32.xlu1 %v2846_v7, %s3000_s24  ;;  %s3002_s24 = smov [#allocation12]  }
0x289b   :  { %s2184_s18 = sshll.u32 %s3002_s24, 4  ;;  %s2185_s18 = int_to_ptr.vmem [resolvable:$true] %s2184_s18 }
0x289c   :  { %v1823_v8 = vpop.permute.xlu0 %1822  ;;  %s2935_s5 = scalar_lea.vmem %s2185_s18, 256  ;;  %p2940_p5 = scmp.lt.s32.totalorder %s2185_s18, %s2185_s18 }
0x289d   :  { %2275 = vst.msk [vmem:[%s3637_s9 + $0x10] sm:$0xf] %vm346_vm2, %v1823_v8  ;;  %p2936_p4 = scmp.ne.s32.totalorder %s2185_s18, %s2935_s5  ;;  %p2941_p6 = scmp.lt.s32.totalorder %s2935_s5, %s2935_s5 }
0x289e   :  { %1131 = vrot.lane.b32.xlu1 %v3400_v18, %s3001_s4 }
0x289f   :  { %p2942_p7 = por %p2941_p6, %p2940_p5 }
0x28a1   :  { %p2943_p8 = pnand %p2942_p7, %p2936_p4 }
0x28a2   :  { %2160 = vrot.lane.b32.xlu1 %v2138_v6, %s3001_s4 }
0x28a6   :  { %1495 = vrot.lane.b32.xlu1 %v2297_v10, %s2994_s1 }
0x28aa   :  { %1713 = vrot.lane.b32.xlu1 %v2299_v59, %s2994_s1 }
0x28ae   :  { %1931 = vrot.lane.b32.xlu1 %v2301_v12, %s2994_s1 }
0x290c   :  { %v2142_v60 = vpop.permute.xlu1 %2141 }
0x290d   :  { %v2144_v15 = vmul.f32 %v2844_v53, %v2142_v60 }
0x290f   :  { %2154 = vrot.lane.b32.xlu0 %v2144_v15, %s2994_s1  ;;  %v2303_v18 = vpack.c.bf16 %v2144_v15, %v2144_v15 }
0x2910   :  { %v1132_v16 = vpop.permute.xlu1 %1131 }
0x2911   :  { %1134 = vst.msk [vmem:[#allocation12] sm:$0xff] %vm144_vm1, %v1132_v16  ;;  %2149 = vrot.lane.b32.xlu1 %v2303_v18, %s2994_s1 }
0x2913   :  { %2040 = vrot.lane.b32.xlu0 %v2302_v3, %s2994_s1 }
0x2914   :  { %v2161_v38 = vpop.permute.xlu1 %2160 }
0x2915   :  { %2164 = vst.msk [vmem:[#allocation12 + $0x8] sm:$0xff] %vm144_vm1, %v2161_v38 }
0x2916   :  { %2946 = shalt.err (!%p2943_p8)
}
0x2917   :  { %s2947_s27 = scalar_lea.hbm %s3639_s11, 256 }
0x2918   :  { %p2948_p9 = scmp.ne.s32.totalorder %s3639_s11, %s2947_s27  ;;  %p2951_p10 = scmp.lt.u32.totalorder %s2947_s27, %s3639_s11 }
0x291a   :  { %p2953_p11 = pnand %p2951_p10, %p2948_p9 }
0x291c   :  { %2956 = shalt.err (!%p2953_p11)
}
0x291d   :  { %2190 = dma.vmem_to_hbm [thread:$0]  %s2185_s18, 256, %s3639_s11, [#allocation13], %s2991_s29, %s2991_s29, %s2992_s30   ;;  %v1496_v17 = vpop.permute.xlu1 %1495 }
0x291e   :  { %2263 = vst.msk [vmem:[%s3637_s9 + $0x4] sm:$0xf] %vm346_vm2, %v1496_v17  ;;  %s3003_s20 = smov [#allocation11]  }
0x291f   :  { %s2172_s11 = sshll.u32 %s3003_s20, 4  ;;  %s2173_s11 = int_to_ptr.vmem [resolvable:$true] %s2172_s11 }
0x2920   :  { %s2957_s17 = scalar_lea.vmem %s2173_s11, 256  ;;  %p2962_p13 = scmp.lt.s32.totalorder %s2173_s11, %s2173_s11 }
0x2921   :  { %v1714_v19 = vpop.permute.xlu1 %1713  ;;  %p2958_p12 = scmp.ne.s32.totalorder %s2173_s11, %s2957_s17  ;;  %p2963_p0 = scmp.lt.s32.totalorder %s2957_s17, %s2957_s17 }
0x2922   :  { %2271 = vst.msk [vmem:[%s3637_s9 + $0xc] sm:$0xf] %vm346_vm2, %v1714_v19 }
0x2923   :  { %p2964_p1 = por %p2963_p0, %p2962_p13 }
0x2925   :  { %v1932_v21 = vpop.permute.xlu1 %1931  ;;  %p2965_p2 = pnand %p2964_p1, %p2958_p12 }
0x2926   :  { %2279 = vst.msk [vmem:[%s3637_s9 + $0x14] sm:$0xf] %vm346_vm2, %v1932_v21 }
0x2981   :  { %v2155_v47 = vpop.permute.xlu0 %2154 }
0x2982   :  { %2158 = vst.msk [vmem:[#allocation11 + $0x8] sm:$0xff] %vm144_vm1, %v2155_v47 }
0x2983   :  { %v2150_v22 = vpop.permute.xlu1 %2149 }
0x2984   :  { %2968 = shalt.err (!%p2965_p2)
}
0x2985   :  { %s2969_s22 = scalar_lea.hbm %s3638_s10, 256 }
0x2986   :  { %p2970_p3 = scmp.ne.s32.totalorder %s3638_s10, %s2969_s22  ;;  %p2973_p4 = scmp.lt.u32.totalorder %s2969_s22, %s3638_s10 }
0x2988   :  { %p2975_p5 = pnand %p2973_p4, %p2970_p3 }
0x298a   :  { %2978 = shalt.err (!%p2975_p5)
}
0x298b   :  { %2178 = dma.vmem_to_hbm [thread:$0]  %s2173_s11, 256, %s3638_s10, [#allocation5], %s2991_s29, %s2991_s29, %s2992_s30   ;;  %v2041_v1 = vpop.permute.xlu0 %2040 }
0x298c   :  { %2287 = vst.msk [vmem:[%s3637_s9 + $0x1c] sm:$0xf] %vm346_vm2, %v2150_v22  ;;  %2283 = vst.msk [vmem:[%s3637_s9 + $0x18] sm:$0xf] %vm346_vm2, %v2041_v1 }
0x298d   :  { %2985 = dma.done.wait [#allocation5], 256  }
0x298e   :  { %2986 = vsyncadd [#allocation5], 4294967040 }
0x298f   :  { %2987 = dma.done.wait [#allocation13], 256  }
0x2990   :  { %2988 = vsyncadd [#allocation13], 4294967040 }
0x2991   :  { %2199 = vsyncpa [#allocation4], 1 }
0x2992   :  { %2200 = vsyncpa [#allocation7], 1 }
0x2993   :  { %2201 = vsyncpa [#allocation10], 1 }
0x2994   :  { %2202 = vsyncpa [#allocation5], 1 }
0x2995   :  { %2203 = vsyncpa [#allocation13], 1 }

</bundles_post_ra>
